<compile_context>
chip_gen: v5e
topology: v5e:2x2
jax: 0.10.0
libtpu: 0.0.40
codegen_flags: <defaults>
</compile_context>

<pallas_src>
import functools

import jax
import jax.numpy as jnp
import numpy as np
from jax.experimental import pallas as pl
from jax.experimental.pallas import tpu as pltpu

EPS = 1e-5


# --------------------------------------------------------------------------------------
# Kernel: one batch tile of the fully BN-folded MLP. All (small) params are VMEM-resident.
# --------------------------------------------------------------------------------------
def _mlp_kernel(x_ref,
                w1_ref, b1_ref, w2_ref, b2_ref, w3_ref, b3_ref, w4_ref, b4_ref,
                wo_ref, bo_ref,
                o_ref):
    mm_dtype = w1_ref.dtype  # matmul/elementwise operand dtype; MXU accumulates in f32

    def layer(h, w_ref, b_ref):
        z = jnp.dot(h, w_ref[...], preferred_element_type=jnp.float32)
        # bias + ReLU in the compute dtype (bf16 on v6e/v7x). Cast once here so the
        # operand of the next matmul is already in mm_dtype.
        return jnp.maximum(z.astype(mm_dtype) + b_ref[...], 0.0)

    # x arrives as f32 straight from HBM; the in-kernel cast co-issues on the VPU.
    h = x_ref[...].astype(mm_dtype)
    h = layer(h, w1_ref, b1_ref)
    h = layer(h, w2_ref, b2_ref)
    h = layer(h, w3_ref, b3_ref)
    h = layer(h, w4_ref, b4_ref)

    # Output head in column form: (tile_b, d_h) @ (d_h, 1) -> (tile_b, 1).
    # No transpose of the activation tile; bias add stays f32.
    o = jnp.dot(h, wo_ref[...], preferred_element_type=jnp.float32) + bo_ref[...]
    o_ref[...] = o.astype(o_ref.dtype)


# --------------------------------------------------------------------------------------
# One-time parameter preparation (NOT on the per-forward hot path).
# --------------------------------------------------------------------------------------
def prepare_params(params, *, matmul_dtype=jnp.bfloat16):
    """Fold inference BatchNorm into the Linears and cast to the kernel dtypes.

    Call ONCE: the ~30 small XLA ops here (rsqrt, scale/shift folds, dtype casts)
    would otherwise dominate the end-to-end latency of the µs-scale kernel.
    Returns a flat tuple matching _mlp_kernel's parameter refs.

    NOTE: in the bf16 path, BN scales are folded into the weights BEFORE the bf16
    cast, so rounding differs slightly from the unfolded torch model
    (inference-only approximation; f32 path is exact).
    """
    s, t = {}, {}
    for i in (1, 2, 3, 4):
        si = params[f"g{i}"] * jax.lax.rsqrt(params[f"var{i}"] + EPS)   # (1, d_h)
        ti = params[f"beta{i}"] - params[f"mean{i}"] * si               # (1, d_h)
        s[i], t[i] = si, ti

    ws, bs = {}, {}
    ws[1], bs[1] = params["w1"], params["b1"]
    for i in (2, 3, 4):
        w = params[f"w{i}"]                      # (d_prev, d_h)
        ws[i] = w * s[i - 1].reshape(-1, 1)      # BN_{i-1} scale folded into input rows
        bs[i] = params[f"b{i}"] + t[i - 1] @ w   # BN_{i-1} shift folded into the bias

    wo = params["wo"]                            # (d_h, 1), column form (no transpose)
    wo_f = wo * s[4].reshape(-1, 1)              # BN4 scale folded in
    bo = params["bo"] + t[4] @ wo                # (1, 1)

    plist = []
    for i in (1, 2, 3, 4):
        plist += [ws[i].astype(matmul_dtype), bs[i].astype(matmul_dtype)]
    plist += [wo_f.astype(matmul_dtype), bo.astype(jnp.float32)]
    return tuple(plist)


# --------------------------------------------------------------------------------------
# Forward: hot path is a single pallas_call, tiled on the batch only.
# --------------------------------------------------------------------------------------
def regression_model_forward(x, prepared, *, tile_b=128, vmem_limit_bytes=None):
    """x: (B, input_dim) float32. prepared: output of prepare_params()."""
    B, d_in = x.shape
    d_h = prepared[0].shape[1]
    num_tiles = pl.cdiv(B, tile_b)  # ragged final tile handled by Pallas block masking

    param_bytes = sum(int(np.prod(p.shape)) * p.dtype.itemsize for p in prepared)
    if vmem_limit_bytes is None:
        # Double-buffered x/out tiles + params + transient activations, 4x headroom,
        # capped at 64 MiB so the same config stays safe on v7x (64 MiB physical VMEM).
        est = (2 * tile_b * d_in * 4          # x tile (f32, double-buffered)
               + 2 * tile_b * 4               # out tile (f32, double-buffered)
               + 2 * param_bytes              # params (double-buffered worst case)
               + 8 * tile_b * d_h * 4)        # activations / f32 accumulators
        vmem_limit_bytes = int(min(max(4 * est, 16 * 1024 * 1024), 64 * 1024 * 1024))

    flops = int(2 * B * (d_in * d_h + 3 * d_h * d_h + d_h))
    bytes_accessed = int(B * d_in * 4 + param_bytes + B * 4)
    cost = pl.CostEstimate(flops=flops, transcendentals=0,
                           bytes_accessed=bytes_accessed)

    # Params: whole (small) arrays resident in VMEM with constant index maps.
    param_specs = [pl.BlockSpec(p.shape, lambda i: (0, 0)) for p in prepared]
    in_specs = [pl.BlockSpec((tile_b, d_in), lambda i: (i, 0))] + param_specs
    out_spec = pl.BlockSpec((tile_b, 1), lambda i: (i, 0))

    return pl.pallas_call(
        _mlp_kernel,
        out_shape=jax.ShapeDtypeStruct((B, 1), jnp.float32),
        grid_spec=pltpu.PrefetchScalarGridSpec(
            num_scalar_prefetch=0,
            grid=(num_tiles,),
            in_specs=in_specs,
            out_specs=out_spec,
        ),
        compiler_params=pltpu.CompilerParams(
            dimension_semantics=("parallel",),   # batch tiles shard across TCs (v7x)
            vmem_limit_bytes=vmem_limit_bytes),
        cost_estimate=cost,
    )(x, *prepared)


# --------------------------------------------------------------------------------------
# Deterministic init + pure-JAX reference (unfolded math = module semantics).
# --------------------------------------------------------------------------------------
def init_params(key, input_dim, intermediate_dim):
    params = {}
    dims_in = [input_dim, intermediate_dim, intermediate_dim, intermediate_dim]
    keys = jax.random.split(key, 25)
    k_it = iter(keys)
    for i in (1, 2, 3, 4):
        fan_in = dims_in[i - 1]
        bound = 1.0 / np.sqrt(fan_in)
        # nn.Linear weight (out, in) -> pre-transposed to (in, out) for x @ W
        params[f"w{i}"] = jax.random.uniform(
            next(k_it), (fan_in, intermediate_dim), jnp.float32, -bound, bound)
        params[f"b{i}"] = jax.random.uniform(
            next(k_it), (1, intermediate_dim), jnp.float32, -bound, bound)
        # BatchNorm1d affine + non-trivial running stats
        params[f"g{i}"] = 1.0 + 0.1 * jax.random.normal(
            next(k_it), (1, intermediate_dim), jnp.float32)
        params[f"beta{i}"] = 0.1 * jax.random.normal(
            next(k_it), (1, intermediate_dim), jnp.float32)
        params[f"mean{i}"] = 0.05 * jax.random.normal(
            next(k_it), (1, intermediate_dim), jnp.float32)
        params[f"var{i}"] = jax.random.uniform(
            next(k_it), (1, intermediate_dim), jnp.float32, 0.5, 1.5)
    bound_o = 1.0 / np.sqrt(intermediate_dim)
    ko1, ko2 = jax.random.split(next(k_it))
    params["wo"] = jax.random.uniform(
        ko1, (intermediate_dim, 1), jnp.float32, -bound_o, bound_o)
    params["bo"] = jax.random.uniform(
        ko2, (1, 1), jnp.float32, -bound_o, bound_o)
    return params


def reference_forward(x, params):
    h = x
    for i in (1, 2, 3, 4):
        h = jnp.maximum(h @ params[f"w{i}"] + params[f"b{i}"], 0.0)
        inv = jax.lax.rsqrt(params[f"var{i}"] + EPS)
        h = (h - params[f"mean{i}"]) * (inv * params[f"g{i}"]) + params[f"beta{i}"]
        # Dropout: identity in inference mode
    return h @ params["wo"] + params["bo"]


if __name__ == "__main__":
    # Small shapes consistent with the module structure (input_dim / intermediate_dim
    # scaled down). B=300 is deliberately NOT a multiple of tile_b to exercise the
    # ragged-final-tile path (grid = 3 at tile_b=128; >=2 steps/TC on v7x, 3 big steps
    # on single-TC v5e/v6e).
    B, INPUT_DIM, INTERMEDIATE_DIM = 300, 256, 128

    key = jax.random.PRNGKey(0)
    kx, kp = jax.random.split(key)
    x = jax.random.normal(kx, (B, INPUT_DIM), jnp.float32)
    params = init_params(kp, INPUT_DIM, INTERMEDIATE_DIM)

    ref = jax.block_until_ready(reference_forward(x, params))

    fwd = jax.jit(functools.partial(regression_model_forward, tile_b=128))

    # f32-matmul path: exact math vs. the unfolded reference (tight check).
    prep_f32 = prepare_params(params, matmul_dtype=jnp.float32)
    out_f32 = jax.block_until_ready(fwd(x, prep_f32))
    assert out_f32.shape == (B, 1)
    np.testing.assert_allclose(np.asarray(out_f32), np.asarray(ref), rtol=1e-4, atol=1e-4)

    # bf16-matmul fast path (default; MXU-native on v5e/v6e/v7x, f32 accumulate): loose check.
    prep_bf16 = prepare_params(params, matmul_dtype=jnp.bfloat16)
    out_bf16 = jax.block_until_ready(fwd(x, prep_bf16))
    assert out_bf16.shape == (B, 1)
    np.testing.assert_allclose(np.asarray(out_bf16), np.asarray(ref), rtol=5e-2, atol=5e-2)

    print("KERNEL_OK")
</pallas_src>

<mosaic_0001>
module attributes {stable_mosaic.version = 11 : i64} {
  func.func @_mlp_kernel(%arg0: i32, %arg1: memref<128x256xf32, #tpu.memory_space<vmem>>, %arg2: memref<256x128xf32, #tpu.memory_space<vmem>>, %arg3: memref<1x128xf32, #tpu.memory_space<vmem>>, %arg4: memref<128x128xf32, #tpu.memory_space<vmem>>, %arg5: memref<1x128xf32, #tpu.memory_space<vmem>>, %arg6: memref<128x128xf32, #tpu.memory_space<vmem>>, %arg7: memref<1x128xf32, #tpu.memory_space<vmem>>, %arg8: memref<128x128xf32, #tpu.memory_space<vmem>>, %arg9: memref<1x128xf32, #tpu.memory_space<vmem>>, %arg10: memref<128x1xf32, #tpu.memory_space<vmem>>, %arg11: memref<1x1xf32, #tpu.memory_space<vmem>>, %arg12: memref<128x1xf32, #tpu.memory_space<vmem>>) attributes {dimension_semantics = [#tpu.dimension_semantics<parallel>], iteration_bounds = array<i64: 3>, scalar_prefetch = 0 : i64, scratch_operands = 0 : i64, tpu.core_type = #tpu.core_type<tc>, window_params = [{transform_indices = @transform_0, window_bounds = array<i64: 128, 256>}, {pipeline_mode = #tpu.pipeline_mode<synchronous>, transform_indices = @transform_1, window_bounds = array<i64: 256, 128>}, {pipeline_mode = #tpu.pipeline_mode<synchronous>, transform_indices = @transform_2, window_bounds = array<i64: 1, 128>}, {pipeline_mode = #tpu.pipeline_mode<synchronous>, transform_indices = @transform_3, window_bounds = array<i64: 128, 128>}, {pipeline_mode = #tpu.pipeline_mode<synchronous>, transform_indices = @transform_4, window_bounds = array<i64: 1, 128>}, {pipeline_mode = #tpu.pipeline_mode<synchronous>, transform_indices = @transform_5, window_bounds = array<i64: 128, 128>}, {pipeline_mode = #tpu.pipeline_mode<synchronous>, transform_indices = @transform_6, window_bounds = array<i64: 1, 128>}, {pipeline_mode = #tpu.pipeline_mode<synchronous>, transform_indices = @transform_7, window_bounds = array<i64: 128, 128>}, {pipeline_mode = #tpu.pipeline_mode<synchronous>, transform_indices = @transform_8, window_bounds = array<i64: 1, 128>}, {pipeline_mode = #tpu.pipeline_mode<synchronous>, transform_indices = @transform_9, window_bounds = array<i64: 128, 1>}, {pipeline_mode = #tpu.pipeline_mode<synchronous>, transform_indices = @transform_10, window_bounds = array<i64: 1, 1>}, {transform_indices = @transform_11, window_bounds = array<i64: 128, 1>}]} {
    %c0 = arith.constant 0 : index
    %c0_0 = arith.constant 0 : index
    %0 = vector.load %arg1[%c0, %c0_0] : memref<128x256xf32, #tpu.memory_space<vmem>>, vector<128x256xf32>
    %c0_1 = arith.constant 0 : index
    %c0_2 = arith.constant 0 : index
    %1 = vector.load %arg2[%c0_1, %c0_2] : memref<256x128xf32, #tpu.memory_space<vmem>>, vector<256x128xf32>
    %cst = arith.constant dense<0.000000e+00> : vector<128x128xf32>
    %2 = tpu.matmul %0, %1, %cst {dimension_numbers = #tpu.dot_dimension_numbers<[1], [0], [0], [1], [0, 0, 1, 1], [], []>} : vector<128x256xf32>, vector<256x128xf32>, vector<128x128xf32> -> vector<128x128xf32>
    %c0_3 = arith.constant 0 : index
    %c0_4 = arith.constant 0 : index
    %3 = vector.load %arg3[%c0_3, %c0_4] : memref<1x128xf32, #tpu.memory_space<vmem>>, vector<1x128xf32>
    %4 = vector.broadcast %3 : vector<1x128xf32> to vector<128x128xf32>
    %5 = arith.addf %2, %4 : vector<128x128xf32>
    %cst_5 = arith.constant 0.000000e+00 : f32
    %6 = vector.broadcast %cst_5 : f32 to vector<128x128xf32>
    %7 = arith.maximumf %5, %6 : vector<128x128xf32>
    %c0_6 = arith.constant 0 : index
    %c0_7 = arith.constant 0 : index
    %8 = vector.load %arg4[%c0_6, %c0_7] : memref<128x128xf32, #tpu.memory_space<vmem>>, vector<128x128xf32>
    %cst_8 = arith.constant dense<0.000000e+00> : vector<128x128xf32>
    %9 = tpu.matmul %7, %8, %cst_8 {dimension_numbers = #tpu.dot_dimension_numbers<[1], [0], [0], [1], [0, 0, 1, 1], [], []>} : vector<128x128xf32>, vector<128x128xf32>, vector<128x128xf32> -> vector<128x128xf32>
    %c0_9 = arith.constant 0 : index
    %c0_10 = arith.constant 0 : index
    %10 = vector.load %arg5[%c0_9, %c0_10] : memref<1x128xf32, #tpu.memory_space<vmem>>, vector<1x128xf32>
    %11 = vector.broadcast %10 : vector<1x128xf32> to vector<128x128xf32>
    %12 = arith.addf %9, %11 : vector<128x128xf32>
    %cst_11 = arith.constant 0.000000e+00 : f32
    %13 = vector.broadcast %cst_11 : f32 to vector<128x128xf32>
    %14 = arith.maximumf %12, %13 : vector<128x128xf32>
    %c0_12 = arith.constant 0 : index
    %c0_13 = arith.constant 0 : index
    %15 = vector.load %arg6[%c0_12, %c0_13] : memref<128x128xf32, #tpu.memory_space<vmem>>, vector<128x128xf32>
    %cst_14 = arith.constant dense<0.000000e+00> : vector<128x128xf32>
    %16 = tpu.matmul %14, %15, %cst_14 {dimension_numbers = #tpu.dot_dimension_numbers<[1], [0], [0], [1], [0, 0, 1, 1], [], []>} : vector<128x128xf32>, vector<128x128xf32>, vector<128x128xf32> -> vector<128x128xf32>
    %c0_15 = arith.constant 0 : index
    %c0_16 = arith.constant 0 : index
    %17 = vector.load %arg7[%c0_15, %c0_16] : memref<1x128xf32, #tpu.memory_space<vmem>>, vector<1x128xf32>
    %18 = vector.broadcast %17 : vector<1x128xf32> to vector<128x128xf32>
    %19 = arith.addf %16, %18 : vector<128x128xf32>
    %cst_17 = arith.constant 0.000000e+00 : f32
    %20 = vector.broadcast %cst_17 : f32 to vector<128x128xf32>
    %21 = arith.maximumf %19, %20 : vector<128x128xf32>
    %c0_18 = arith.constant 0 : index
    %c0_19 = arith.constant 0 : index
    %22 = vector.load %arg8[%c0_18, %c0_19] : memref<128x128xf32, #tpu.memory_space<vmem>>, vector<128x128xf32>
    %cst_20 = arith.constant dense<0.000000e+00> : vector<128x128xf32>
    %23 = tpu.matmul %21, %22, %cst_20 {dimension_numbers = #tpu.dot_dimension_numbers<[1], [0], [0], [1], [0, 0, 1, 1], [], []>} : vector<128x128xf32>, vector<128x128xf32>, vector<128x128xf32> -> vector<128x128xf32>
    %c0_21 = arith.constant 0 : index
    %c0_22 = arith.constant 0 : index
    %24 = vector.load %arg9[%c0_21, %c0_22] : memref<1x128xf32, #tpu.memory_space<vmem>>, vector<1x128xf32>
    %25 = vector.broadcast %24 : vector<1x128xf32> to vector<128x128xf32>
    %26 = arith.addf %23, %25 : vector<128x128xf32>
    %cst_23 = arith.constant 0.000000e+00 : f32
    %27 = vector.broadcast %cst_23 : f32 to vector<128x128xf32>
    %28 = arith.maximumf %26, %27 : vector<128x128xf32>
    %c0_24 = arith.constant 0 : index
    %c0_25 = arith.constant 0 : index
    %29 = vector.load %arg10[%c0_24, %c0_25] : memref<128x1xf32, #tpu.memory_space<vmem>>, vector<128x1xf32>
    %cst_26 = arith.constant dense<0.000000e+00> : vector<128x1xf32>
    %30 = tpu.matmul %28, %29, %cst_26 {dimension_numbers = #tpu.dot_dimension_numbers<[1], [0], [0], [1], [0, 0, 1, 1], [], []>} : vector<128x128xf32>, vector<128x1xf32>, vector<128x1xf32> -> vector<128x1xf32>
    %c0_27 = arith.constant 0 : index
    %c0_28 = arith.constant 0 : index
    %31 = vector.load %arg11[%c0_27, %c0_28] : memref<1x1xf32, #tpu.memory_space<vmem>>, vector<1x1xf32>
    %32 = vector.broadcast %31 : vector<1x1xf32> to vector<128x1xf32>
    %33 = arith.addf %30, %32 : vector<128x1xf32>
    %c0_29 = arith.constant 0 : index
    %c0_30 = arith.constant 0 : index
    %34 = vector.load %arg12[%c0_29, %c0_30] : memref<128x1xf32, #tpu.memory_space<vmem>>, vector<128x1xf32>
    tpu.vector_store %arg12[%c0_29, %c0_30], %33 {strides = array<i32>} : memref<128x1xf32, #tpu.memory_space<vmem>>, vector<128x1xf32>,
    return
  }
  func.func @transform_0(%arg0: i32) -> (i32, i32) {
    %c0_i32 = arith.constant 0 : i32
    %c0_i32_0 = arith.constant 0 : i32
    return %arg0, %c0_i32 : i32, i32
  }
  func.func @transform_1(%arg0: i32) -> (i32, i32) {
    %c0_i32 = arith.constant 0 : i32
    %c0_i32_0 = arith.constant 0 : i32
    %c0_i32_1 = arith.constant 0 : i32
    return %c0_i32, %c0_i32_0 : i32, i32
  }
  func.func @transform_2(%arg0: i32) -> (i32, i32) {
    %c0_i32 = arith.constant 0 : i32
    %c0_i32_0 = arith.constant 0 : i32
    %c0_i32_1 = arith.constant 0 : i32
    return %c0_i32, %c0_i32_0 : i32, i32
  }
  func.func @transform_3(%arg0: i32) -> (i32, i32) {
    %c0_i32 = arith.constant 0 : i32
    %c0_i32_0 = arith.constant 0 : i32
    %c0_i32_1 = arith.constant 0 : i32
    return %c0_i32, %c0_i32_0 : i32, i32
  }
  func.func @transform_4(%arg0: i32) -> (i32, i32) {
    %c0_i32 = arith.constant 0 : i32
    %c0_i32_0 = arith.constant 0 : i32
    %c0_i32_1 = arith.constant 0 : i32
    return %c0_i32, %c0_i32_0 : i32, i32
  }
  func.func @transform_5(%arg0: i32) -> (i32, i32) {
    %c0_i32 = arith.constant 0 : i32
    %c0_i32_0 = arith.constant 0 : i32
    %c0_i32_1 = arith.constant 0 : i32
    return %c0_i32, %c0_i32_0 : i32, i32
  }
  func.func @transform_6(%arg0: i32) -> (i32, i32) {
    %c0_i32 = arith.constant 0 : i32
    %c0_i32_0 = arith.constant 0 : i32
    %c0_i32_1 = arith.constant 0 : i32
    return %c0_i32, %c0_i32_0 : i32, i32
  }
  func.func @transform_7(%arg0: i32) -> (i32, i32) {
    %c0_i32 = arith.constant 0 : i32
    %c0_i32_0 = arith.constant 0 : i32
    %c0_i32_1 = arith.constant 0 : i32
    return %c0_i32, %c0_i32_0 : i32, i32
  }
  func.func @transform_8(%arg0: i32) -> (i32, i32) {
    %c0_i32 = arith.constant 0 : i32
    %c0_i32_0 = arith.constant 0 : i32
    %c0_i32_1 = arith.constant 0 : i32
    return %c0_i32, %c0_i32_0 : i32, i32
  }
  func.func @transform_9(%arg0: i32) -> (i32, i32) {
    %c0_i32 = arith.constant 0 : i32
    %c0_i32_0 = arith.constant 0 : i32
    %c0_i32_1 = arith.constant 0 : i32
    return %c0_i32, %c0_i32_0 : i32, i32
  }
  func.func @transform_10(%arg0: i32) -> (i32, i32) {
    %c0_i32 = arith.constant 0 : i32
    %c0_i32_0 = arith.constant 0 : i32
    %c0_i32_1 = arith.constant 0 : i32
    return %c0_i32, %c0_i32_0 : i32, i32
  }
  func.func @transform_11(%arg0: i32) -> (i32, i32) {
    %c0_i32 = arith.constant 0 : i32
    %c0_i32_0 = arith.constant 0 : i32
    return %arg0, %c0_i32 : i32, i32
  }
}

</mosaic_0001>

<bundles_post_ra>
// kernel: regression_model_forward.1
= control target key start
LH: loop header
LB: loop body
LE: loop exit
PB: predicated region body
PF: predicated region fallthrough
CT: control target
= control target key end

     0   :  { %s2415_s0 = inlined_call_operand.hbm [shape: f32[300,256], index: 0, kind: input, shape index: {}]   ;;  %s2416_s1 = inlined_call_operand.hbm [shape: f32[256,128], index: 1, kind: input, shape index: {}]   ;;  %s2417_s2 = inlined_call_operand.vmem [shape: f32[1,128], index: 2, kind: input, shape index: {}]   ;;  %s2418_s3 = inlined_call_operand.vmem [shape: f32[128,128], index: 3, kind: input, shape index: {}]   ;;  %s2419_s4 = inlined_call_operand.vmem [shape: f32[1,128], index: 4, kind: input, shape index: {}]   ;;  %s2420_s5 = inlined_call_operand.hbm [shape: f32[128,128], index: 5, kind: input, shape index: {}]   ;;  %s2421_s6 = inlined_call_operand.vmem [shape: f32[1,128], index: 6, kind: input, shape index: {}]   ;;  %s2422_s7 = inlined_call_operand.hbm [shape: f32[128,128], index: 7, kind: input, shape index: {}]   ;;  %s2423_s8 = inlined_call_operand.vmem [shape: f32[1,128], index: 8, kind: input, shape index: {}]   ;;  %s2424_s9 = inlined_call_operand.vmem [shape: f32[128,1], index: 9, kind: input, shape index: {}]   ;;  %s2425_s10 = inlined_call_operand.<no memory space> [shape: f32[1,1], index: 10, kind: input, shape index: {}]   ;;  %s2426_s11 = inlined_call_operand.vmem [shape: f32[300,1], index: 11, kind: output, shape index: {}]  }
   0x1   :  { %2431 = sst [smem:[#allocation16_spill]] %s2416_s1  ;;  %v16_v0 = vstv %s2425_s10 }
   0x2   :  { %17 = vst [vmem:[#allocation2] sm:$0x1] %v16_v0 }
   0x3   :  { %18 = vsyncpa [#allocation4], 0 }
   0x4   :  { %20 = vsyncpa [#allocation4 + $0x1], 0 }
   0x5   :  { %21 = vsyncpa [#allocation6], 0 }
   0x6   :  { %22 = vsyncpa [#allocation9], 0  ;;  %s1931_s19 = smov 0   ;;  %s1933_s20 = smov 0  }
   0x7   :  { %s1935_s21 = smov 0   ;;  %s1937_s22 = smov 0  }
   0x8 LB: > { %s1950_s10 = sadd.s32 4294967295, %s1826_s22   ;;  %s1953_s23 = sadd.s32 1, %s1826_s22   ;;  %s1826_s22 = sphi %s1937_s22, %s2451_s22   ;;  %s1822_s21 = sphi %s1935_s21, %s2455_s21   ;;  %s1818_s20 = sphi %s1933_s20, %s2454_s20   ;;  %s1814_s19 = sphi %s1931_s19, %s2453_s19  }
   0x9   : > { %2432 = sst [smem:[#allocation14_spill]] %s1953_s23  ;;  %s32_s24 = ssub.s32 %s1826_s22, %s1953_s23 }
   0xa   : > { %s35_s25 = sadd.s32 1, %s1822_s21  ;;  %p33_p0 = scmp.eq.s32.totalorder %s32_s24, 0 }
   0xb   : > { %p42_p1 = scmp.ne.s32.totalorder %s1822_s21, %s1818_s20  ;;  %p43_p2 = scmp.eq.s32.totalorder %s1826_s22, 0 }
   0xc   : > { %p48_p3 = scmp.ne.s32.totalorder %s1818_s20, %s1814_s19  ;;  %p2430_p5 = scmp.eq.s32.totalorder %s1950_s10, 0 }
   0xd   : > { %s1963_s26 = scalar_select %p33_p0, %s1822_s21, %s35_s25  }
   0xe   : > { %p1965_p4 = por %p43_p2, %p42_p1  ;;  %p282_p6 = scmp.eq.s32.totalorder %s1950_s10, 2 }
   0xf   : > { %2433 = sst [smem:[#allocation15_spill]] %s1963_s26  ;;  %p1411_p7 = scmp.ge.s32.totalorder %s1826_s22, 1 }
  0x10   : > { %p1974_p8 = por %p2430_p5, %p48_p3  ;;  %p295_p9 = scmp.lt.s32.totalorder %s1826_s22, 4 }
  0x11   : > { %p1979_p10 = por %p282_p6, %p42_p1  ;;  %s2438_s1 = sld [smem:[#allocation16_spill]] }
  0x12   : > { %p1983_p11 = pnand %p1411_p7, %p295_p9  ;;  %s1860_s15 = smov [#allocation5]  }
  0x13   : > { %s308_s16 = sshll.u32 %s1860_s15, 4  ;;  %s329_s24 = sshll.u32 %s2420_s5, 4  ;;  %s309_s16 = int_to_ptr.vmem [resolvable:$true] %s308_s16  ;;  %s330_s24 = int_to_ptr.hbm [resolvable:$true] %s329_s24 }
  0x14   : > { %p1499_p12 = pneg %p1983_p11  ;;  %s1861_s25 = smov 128  }
  0x15   : > { %s1862_s12 = smov 8   ;;  %s1863_s13 = smov [#allocation7]  }
  0x16   : > { %p1994_p13 = pnand %p1499_p12, %p2430_p5  ;;  %s331_s15 = sshll.u32 %s1863_s13, 4  ;;  %s332_s15 = int_to_ptr.vmem [resolvable:$true] %s331_s15 }
  0x17   : > { %s306_s14 = sshll.u32 %s2438_s1, 4  ;;  %s346_s23 = sshll.u32 %s2422_s7, 4  ;;  %s307_s14 = int_to_ptr.hbm [resolvable:$true] %s306_s14  ;;  %s347_s23 = int_to_ptr.hbm [resolvable:$true] %s346_s23 }
  0x18   : > { %1502 = dma.hbm_to_vmem [thread:$0]  (!%p1994_p13), %s307_s14, 4096, %s309_s16, [#allocation6], %s1861_s25, %s1861_s25, %s1862_s12  }
  0x19   : > { %1505 = dma.hbm_to_vmem [thread:$0]  (!%p1994_p13), %s330_s24, 2048, %s332_s15, [#allocation6], %s1861_s25, %s1861_s25, %s1862_s12  }
  0x1a   : > { %s1864_s18 = smov [#allocation8]   ;;  %p1415_p0 = scmp.ge.s32.totalorder %s1826_s22, 3 }
  0x1b   : > { %s348_s19 = sshll.u32 %s1864_s18, 4  ;;  %s349_s19 = int_to_ptr.vmem [resolvable:$true] %s348_s19 }
  0x1c   : > { %1508 = dma.hbm_to_vmem [thread:$0]  (!%p1994_p13), %s347_s23, 2048, %s349_s19, [#allocation9], %s1861_s25, %s1861_s25, %s1862_s12  }
  0x1d   : > { %367 = sbr.rel (%p1415_p0) target bundleno = 71 (0x47), region = 56 }
  0x22   : > { %370 = sbr.rel (!%p1965_p4) target bundleno = 71 (0x47), region = 60  ;;  %s371_s14 = sand.u32 (%p1965_p4), 1, %s1822_s21  }
  0x23   : > { %s1417_s1 = sshll.u32 (%p1965_p4), %s1826_s22, 4  ;;  %s1416_s26 = sshll.u32 (%p1965_p4), %s371_s14, 8 }
  0x24   : > { %s377_s16 = ssub.s32 (%p1965_p4), 38, %s1417_s1  ;;  %s2018_s23 = scalar_lea.sflag (%p1965_p4), [#allocation4], %s371_s14 }
  0x25   : > { %p378_p1 = scmp.lt.s32.totalorder (%p1965_p4), %s377_s16, 16  ;;  %s375_s25 = scalar_lea.vmem (%p1965_p4), [#allocation3], %s1416_s26 }
  0x27   : > { %s2457_s16 = smov (!%p378_p1, %s377_s16), 16 }
  0x28   : > { %s1448_s24 = sshll.u32 %s2457_s16, 4 }
  0x29   : > { %s382_s13 = ssub.s32 256, %s1448_s24 }
  0x2a   : > { %s383_s17 = sshll.u32 %s382_s13, 4 }
  0x2b   : > { %384 = vsyncadd %s2018_s23, %s383_s17  ;;  %p2021_p2 = scmp.ne.s32.totalorder %s1448_s24, 0  ;;  %s1450_s12 = sshll.u32 %s1826_s22, 8 }
  0x2c   : > { %s388_s19 = scalar_lea.hbm %s2415_s0, %s1450_s12  ;;  %s2029_s1 = sshll.u32 %s375_s25, 4  ;;  %s393_s1 = int_to_ptr.vmem [resolvable:$true] %s2029_s1 }
  0x2d   : > { %s390_s14 = sshll.u32 %s388_s19, 4  ;;  %s2429_s26 = sshll.u32 %s2457_s16, 8  ;;  %s2032_s14 = int_to_ptr.hbm [resolvable:$true] %s390_s14 }
  0x2e   : > { %s1713_s13 = sshra.s32 %s2032_s14, 4  ;;  %s1715_s24 = sshrl.u32 %s2429_s26, 4  ;;  %s1714_s13 = int_to_ptr.hbm [resolvable:$true] %s1713_s13 }
  0x2f   : > { %s1720_s17 = scalar_lea.hbm %s1714_s13, %s1715_s24  ;;  %s1724_s25 = scalar_lea.hbm %s2415_s0, 608 }
  0x30   : > { %p1721_p3 = scmp.ne.s32.totalorder %s1714_s13, %s1720_s17  ;;  %p1725_p7 = scmp.lt.s32.totalorder %s1714_s13, %s2415_s0 }
  0x31   : > { %p1726_p9 = scmp.lt.s32.totalorder %s1724_s25, %s1720_s17 }
  0x32   : > { %p1722_p4 = pnand %p1721_p3, %p2021_p2 }
  0x33   : > { %p1727_p12 = por %p1726_p9, %p1725_p7 }
  0x34   : > { %p1723_p6 = pneg %p1722_p4 }
  0x36   : > { %p1728_p13 = pnand %p1727_p12, %p1723_p6 }
  0x38   : > { %1731 = shalt.err (!%p1728_p13)
}
  0x39   : > { %s1732_s19 = sshra.s32 %s393_s1, 4  ;;  %s1865_s22 = smov [#allocation3]   ;;  %s1733_s19 = int_to_ptr.vmem [resolvable:$true] %s1732_s19 }
  0x3a   : > { %s1739_s26 = scalar_lea.vmem %s1733_s19, %s1715_s24  ;;  %s1743_s12 = scalar_lea.vmem %s1865_s22, 512 }
  0x3b   : > { %p1740_p0 = scmp.ne.s32.totalorder %s1733_s19, %s1739_s26  ;;  %p1745_p4 = scmp.lt.s32.totalorder %s1743_s12, %s1739_s26 }
  0x3d   : > { %p1741_p1 = pnand %p1740_p0, %p2021_p2 }
  0x3f   : > { %p1742_p3 = pneg %p1741_p1 }
  0x41   : > { %p1747_p5 = pnand %p1745_p4, %p1742_p3 }
  0x43   : > { %1750 = shalt.err (!%p1747_p5)
}
  0x44   : > { %s1866_s13 = smov 256   ;;  %s1867_s17 = smov 16  }
  0x45   : > { %s2441_s25 = sshll.u32 %s2457_s16, 8 }
  0x46   : > { %398 = dma.hbm_to_vmem [thread:$0]  (%p2021_p2), %s2032_s14, %s2441_s25, %s393_s1, %s2018_s23, %s1866_s13, %s1866_s13, %s1867_s17  }
  0x47 PF: > { %404 = sbr.rel (%p1983_p11) target bundleno = 946 (0x3b2), region = 64  ;;  %s2061_s26 = sand.u32 (!%p1983_p11), 1, %s1818_s20  }
  0x48   : > { %s1426_s24 = sshll.u32 (!%p1983_p11), %s2061_s26, 8  ;;  %s407_s15 = scalar_lea.sflag (!%p1983_p11), [#allocation4], %s2061_s26 }
  0x49   : > { %s2065_s18 = scalar_lea.vmem (!%p1983_p11), [#allocation3], %s1426_s24 }
  0x4c   : > { %1801 = dma.done.wait (%p1974_p8), %s407_s15, 4096  }
  0x4d   : > { %1803 = vsyncadd (%p1974_p8), %s407_s15, 4294963200  ;;  %p2442_p5 = scmp.eq.s32.totalorder %s1950_s10, 0 }
  0x4f   : > { %1805 = dma.done.wait (%p2442_p5), [#allocation6], 6144   ;;  %p2443_p11 = pmov %p2442_p5 }
  0x50   : > { %p2444_p2 = pmov %p2442_p5 }
  0x51   : > { %1807 = vsyncadd (%p2443_p11), [#allocation6], 4294961152 }
  0x52   : > { %1809 = dma.done.wait (%p2444_p2), [#allocation9], 2048   ;;  %p2445_p6 = pmov %p2444_p2 }
  0x53   : > { %v522_v1 = vld [vmem:[#allocation5 + $0x78] sm:$0xff]  ;;  %v521_v2 = vld [vmem:[#allocation5 + $0x70] sm:$0xff]  ;;  %v520_v5 = vld [vmem:[#allocation5 + $0x68] sm:$0xff]  ;;  %s1430_s12 = sshll.u32 %s2061_s26, 7  ;;  %vm1077_vm0 = vcmask 7168   ;;  %s1432_s26 = sshll.u32 (%p1979_p10), %s1950_s10, 4 }
  0x54   : > { %1811 = vsyncadd (%p2445_p6), [#allocation9], 4294965248  ;;  %v538_v3 = vld [vmem:[#allocation5 + $0xf8] sm:$0xff]  ;;  %543 = vmatpush.msra.mxu0 %v522_v1  ;;  %v537_v4 = vld [vmem:[#allocation5 + $0xf0] sm:$0xff]  ;;  %1454 = vmatpush.msra.mxu2 %v522_v1  ;;  %s2274_s13 = scalar_lea.vmem [#allocation10], %s1430_s12   ;;  %s1451_s17 = sshll.u32 (%p1979_p10), %s1950_s10, 7 }
  0x55   : > { %608 = vmatpush.msra.mxu1 %v538_v3  ;;  %v536_v6 = vld [vmem:[#allocation5 + $0xe8] sm:$0xff]  ;;  %1470 = vmatpush.msra.mxu3 %v538_v3  ;;  %v519_v7 = vld [vmem:[#allocation5 + $0x60] sm:$0xff]  ;;  %v518_v9 = vld [vmem:[#allocation5 + $0x58] sm:$0xff]  ;;  %s1102_s25 = ssub.s32 (%p1979_p10), 38, %s1432_s26  ;;  %s2315_s28 = scalar_lea.vmem (%p1979_p10), %s2426_s11, %s1451_s17  }
  0x56   : > { %544 = vmatpush.msra.mxu0 %v521_v2  ;;  %v535_v8 = vld [vmem:[#allocation5 + $0xe0] sm:$0xff]  ;;  %1455 = vmatpush.msra.mxu2 %v521_v2  ;;  %v534_v10 = vld [vmem:[#allocation5 + $0xd8] sm:$0xff]  ;;  %v517_v11 = vld [vmem:[#allocation5 + $0x50] sm:$0xff]  ;;  %p1103_p8 = scmp.lt.s32.totalorder (%p1979_p10), %s1102_s25, 16 }
  0x57   : > { %609 = vmatpush.msra.mxu1 %v537_v4  ;;  %1471 = vmatpush.msra.mxu3 %v537_v4  ;;  %v533_v12 = vld [vmem:[#allocation5 + $0xd0] sm:$0xff]  ;;  %v516_v13 = vld [vmem:[#allocation5 + $0x48] sm:$0xff]  ;;  %v515_v15 = vld [vmem:[#allocation5 + $0x40] sm:$0xff] }
  0x58   : > { %545 = vmatpush.msra.mxu0 %v520_v5  ;;  %1456 = vmatpush.msra.mxu2 %v520_v5  ;;  %v532_v14 = vld [vmem:[#allocation5 + $0xc8] sm:$0xff]  ;;  %v531_v16 = vld [vmem:[#allocation5 + $0xc0] sm:$0xff]  ;;  %v514_v17 = vld [vmem:[#allocation5 + $0x38] sm:$0xff] }
  0x59   : > { %610 = vmatpush.msra.mxu1 %v536_v6  ;;  %1472 = vmatpush.msra.mxu3 %v536_v6  ;;  %v530_v18 = vld [vmem:[#allocation5 + $0xb8] sm:$0xff]  ;;  %v513_v19 = vld [vmem:[#allocation5 + $0x30] sm:$0xff]  ;;  %v512_v21 = vld [vmem:[#allocation5 + $0x28] sm:$0xff] }
  0x5a   : > { %546 = vmatpush.msra.mxu0 %v519_v7  ;;  %1457 = vmatpush.msra.mxu2 %v519_v7  ;;  %v529_v20 = vld [vmem:[#allocation5 + $0xb0] sm:$0xff]  ;;  %v528_v22 = vld [vmem:[#allocation5 + $0xa8] sm:$0xff]  ;;  %v511_v23 = vld [vmem:[#allocation5 + $0x20] sm:$0xff] }
  0x5b   : > { %611 = vmatpush.msra.mxu1 %v535_v8  ;;  %1473 = vmatpush.msra.mxu3 %v535_v8  ;;  %v527_v24 = vld [vmem:[#allocation5 + $0xa0] sm:$0xff]  ;;  %v510_v25 = vld [vmem:[#allocation5 + $0x18] sm:$0xff]  ;;  %v509_v27 = vld [vmem:[#allocation5 + $0x10] sm:$0xff] }
  0x5c   : > { %547 = vmatpush.msra.mxu0 %v518_v9  ;;  %1458 = vmatpush.msra.mxu2 %v518_v9  ;;  %v526_v26 = vld [vmem:[#allocation5 + $0x98] sm:$0xff]  ;;  %v525_v28 = vld [vmem:[#allocation5 + $0x90] sm:$0xff]  ;;  %v508_v29 = vld [vmem:[#allocation5 + $0x8] sm:$0xff] }
  0x5d   : > { %612 = vmatpush.msra.mxu1 %v534_v10  ;;  %1474 = vmatpush.msra.mxu3 %v534_v10  ;;  %v524_v30 = vld [vmem:[#allocation5 + $0x88] sm:$0xff]  ;;  %v507_v31 = vld [vmem:[#allocation5] sm:$0xff]  ;;  %v477_v35 = vld [vmem:[%s2065_s18 + $0x10] sm:$0xff] }
  0x5e   : > { %548 = vmatpush.msra.mxu0 %v517_v11  ;;  %1459 = vmatpush.msra.mxu2 %v517_v11  ;;  %v523_v32 = vld [vmem:[#allocation5 + $0x80] sm:$0xff]  ;;  %v476_v34 = vld [vmem:[%s2065_s18 + $0x8] sm:$0xff]  ;;  %v478_v36 = vld [vmem:[%s2065_s18 + $0x18] sm:$0xff] }
  0x5f   : > { %613 = vmatpush.msra.mxu1 %v533_v12  ;;  %1475 = vmatpush.msra.mxu3 %v533_v12  ;;  %v475_v33 = vld [vmem:[%s2065_s18] sm:$0xff]  ;;  %v480_v38 = vld [vmem:[%s2065_s18 + $0x28] sm:$0xff]  ;;  %v481_v39 = vld [vmem:[%s2065_s18 + $0x30] sm:$0xff] }
  0x60   : > { %549 = vmatpush.msra.mxu0 %v516_v13  ;;  %1460 = vmatpush.msra.mxu2 %v516_v13  ;;  %v479_v37 = vld [vmem:[%s2065_s18 + $0x20] sm:$0xff]  ;;  %v482_v40 = vld [vmem:[%s2065_s18 + $0x38] sm:$0xff]  ;;  %v492_v42 = vld [vmem:[%s2065_s18 + $0x88] sm:$0xff] }
  0x61   : > { %614 = vmatpush.msra.mxu1 %v532_v14  ;;  %1476 = vmatpush.msra.mxu3 %v532_v14  ;;  %v491_v41 = vld [vmem:[%s2065_s18 + $0x80] sm:$0xff]  ;;  %v704_v43 = vld [vmem:[%s2418_s3 + $0x78] sm:$0xff]  ;;  %v703_v44 = vld [vmem:[%s2418_s3 + $0x70] sm:$0xff] }
  0x62   : > { %550 = vmatpush.msra.mxu0 %v515_v15  ;;  %1461 = vmatpush.msra.mxu2 %v515_v15  ;;  %v702_v45 = vld [vmem:[%s2418_s3 + $0x68] sm:$0xff]  ;;  %v493_v48 = vld [vmem:[%s2065_s18 + $0x90] sm:$0xff]  ;;  %v494_v49 = vld [vmem:[%s2065_s18 + $0x98] sm:$0xff] }
  0x63   : > { %615 = vmatpush.msra.mxu1 %v531_v16  ;;  %1477 = vmatpush.msra.mxu3 %v531_v16  ;;  %v483_v46 = vld [vmem:[%s2065_s18 + $0x40] sm:$0xff]  ;;  %v484_v47 = vld [vmem:[%s2065_s18 + $0x48] sm:$0xff]  ;;  %v700_v51 = vld [vmem:[%s2418_s3 + $0x58] sm:$0xff] }
  0x64   : > { %551 = vmatpush.msra.mxu0 %v514_v17  ;;  %1462 = vmatpush.msra.mxu2 %v514_v17  ;;  %v701_v50 = vld [vmem:[%s2418_s3 + $0x60] sm:$0xff]  ;;  %v699_v52 = vld [vmem:[%s2418_s3 + $0x50] sm:$0xff]  ;;  %v698_v57 = vld [vmem:[%s2418_s3 + $0x48] sm:$0xff] }
  0x65   : > { %616 = vmatpush.msra.mxu1 %v530_v18  ;;  %1478 = vmatpush.msra.mxu3 %v530_v18  ;;  %v485_v53 = vld [vmem:[%s2065_s18 + $0x50] sm:$0xff]  ;;  %v486_v54 = vld [vmem:[%s2065_s18 + $0x58] sm:$0xff]  ;;  %v495_v55 = vld [vmem:[%s2065_s18 + $0xa0] sm:$0xff] }
  0x66   : > { %552 = vmatpush.msra.mxu0 %v513_v19  ;;  %1463 = vmatpush.msra.mxu2 %v513_v19  ;;  %v496_v56 = vld [vmem:[%s2065_s18 + $0xa8] sm:$0xff]  ;;  %v697_v58 = vld [vmem:[%s2418_s3 + $0x40] sm:$0xff]  ;;  %v696_v59 = vld [vmem:[%s2418_s3 + $0x38] sm:$0xff] }
  0x67   : > { %617 = vmatpush.msra.mxu1 %v529_v20  ;;  %1479 = vmatpush.msra.mxu3 %v529_v20  ;;  %v487_v60 = vld [vmem:[%s2065_s18 + $0x60] sm:$0xff]  ;;  %v488_v61 = vld [vmem:[%s2065_s18 + $0x68] sm:$0xff]  ;;  %v497_v62 = vld [vmem:[%s2065_s18 + $0xb0] sm:$0xff] }
  0x68   : > { %553 = vmatpush.msra.mxu0 %v512_v21  ;;  %1464 = vmatpush.msra.mxu2 %v512_v21  ;;  %v498_v63 = vld [vmem:[%s2065_s18 + $0xb8] sm:$0xff]  ;;  %v695_v0 = vld [vmem:[%s2418_s3 + $0x30] sm:$0xff]  ;;  %v694_v1 = vld [vmem:[%s2418_s3 + $0x28] sm:$0xff] }
  0x69   : > { %618 = vmatpush.msra.mxu1 %v528_v22  ;;  %1480 = vmatpush.msra.mxu3 %v528_v22  ;;  %v693_v2 = vld [vmem:[%s2418_s3 + $0x20] sm:$0xff]  ;;  %v489_v3 = vld [vmem:[%s2065_s18 + $0x70] sm:$0xff]  ;;  %v500_v6 = vld [vmem:[%s2065_s18 + $0xc8] sm:$0xff] }
  0x6a   : > { %554 = vmatpush.msra.mxu0 %v511_v23  ;;  %1465 = vmatpush.msra.mxu2 %v511_v23  ;;  %v490_v4 = vld [vmem:[%s2065_s18 + $0x78] sm:$0xff]  ;;  %v499_v5 = vld [vmem:[%s2065_s18 + $0xc0] sm:$0xff]  ;;  %v691_v8 = vld [vmem:[%s2418_s3 + $0x10] sm:$0xff] }
  0x6b   : > { %619 = vmatpush.msra.mxu1 %v527_v24  ;;  %1481 = vmatpush.msra.mxu3 %v527_v24  ;;  %v692_v7 = vld [vmem:[%s2418_s3 + $0x18] sm:$0xff]  ;;  %v690_v9 = vld [vmem:[%s2418_s3 + $0x8] sm:$0xff]  ;;  %v689_v16 = vld [vmem:[%s2418_s3] sm:$0xff] }
  0x6c   : > { %555 = vmatpush.msra.mxu0 %v510_v25  ;;  %1466 = vmatpush.msra.mxu2 %v510_v25  ;;  %v501_v10 = vld [vmem:[%s2065_s18 + $0xd0] sm:$0xff]  ;;  %v502_v11 = vld [vmem:[%s2065_s18 + $0xd8] sm:$0xff]  ;;  %v503_v12 = vld [vmem:[%s2065_s18 + $0xe0] sm:$0xff] }
  0x6d   : > { %620 = vmatpush.msra.mxu1 %v526_v26  ;;  %1482 = vmatpush.msra.mxu3 %v526_v26  ;;  %v504_v13 = vld [vmem:[%s2065_s18 + $0xe8] sm:$0xff]  ;;  %v505_v14 = vld [vmem:[%s2065_s18 + $0xf0] sm:$0xff]  ;;  %v506_v15 = vld [vmem:[%s2065_s18 + $0xf8] sm:$0xff] }
  0x6e   : > { %556 = vmatpush.msra.mxu0 %v509_v27  ;;  %1467 = vmatpush.msra.mxu2 %v509_v27  ;;  %v2162_v17 = vld [vmem:[%s2417_s2] ss:$0 sm:$0xff] }
  0x6f   : > { %621 = vmatpush.msra.mxu1 %v525_v28  ;;  %1483 = vmatpush.msra.mxu3 %v525_v28 }
  0x70   : > { %557 = vmatpush.msra.mxu0 %v508_v29  ;;  %1468 = vmatpush.msra.mxu2 %v508_v29 }
  0x71   : > { %622 = vmatpush.msra.mxu1 %v524_v30  ;;  %1484 = vmatpush.msra.mxu3 %v524_v30 }
  0x72   : > { %558 = vmatpush.msra.mxu0 %v507_v31  ;;  %1469 = vmatpush.msra.mxu2 %v507_v31 }
  0x73   : > { %623 = vmatpush.msra.mxu1 %v523_v32  ;;  %559 = vmatmul.f32.vlgmr.msra.gmra.mxu0 %v475_v33 }
  0x74   : > { %624 = vmatmul.f32.vlgmr.msra.gmra.mxu1 %v476_v34  ;;  %1485 = vmatpush.msra.mxu3 %v523_v32 }
  0x75   : > { %583 = vmatmul.f32.vlgmr.msra.gmra.mxu2 %v491_v41  ;;  %648 = vmatmul.f32.vlgmr.msra.gmra.mxu3 %v492_v42 }
  0x76   : > { %709 = vmatpush.msrb.mxu2 %v704_v43 }
  0x78   : > { %710 = vmatpush.msrb.mxu2 %v703_v44 }
  0x7a   : > { %711 = vmatpush.msrb.mxu2 %v702_v45 }
  0x7b   : > { %562 = vmatmul.f32.gmra.mxu0 %v477_v35 }
  0x7c   : > { %627 = vmatmul.f32.gmra.mxu1 %v478_v36  ;;  %712 = vmatpush.msrb.mxu2 %v701_v50  ;;  %v805_v50 = vld [vmem:[#allocation7 + $0x78] sm:$0xff] }
  0x7d   : > { %586 = vmatmul.f32.gmra.mxu2 %v493_v48  ;;  %651 = vmatmul.f32.gmra.mxu3 %v494_v49 }
  0x7e   : > { %713 = vmatpush.msrb.mxu2 %v700_v51  ;;  %v804_v51 = vld [vmem:[#allocation7 + $0x70] sm:$0xff]  ;;  %810 = vmatpush.msrb.mxu3 %v805_v50 }
  0x80   : > { %714 = vmatpush.msrb.mxu2 %v699_v52  ;;  %811 = vmatpush.msrb.mxu3 %v804_v51  ;;  %v2183_v51 = vld [vmem:[%s2419_s4] ss:$0 sm:$0xff] }
  0x82   : > { %715 = vmatpush.msrb.mxu2 %v698_v57 }
  0x83   : > { %565 = vmatmul.f32.gmra.mxu0 %v479_v37 }
  0x84   : > { %630 = vmatmul.f32.gmra.mxu1 %v480_v38  ;;  %716 = vmatpush.msrb.mxu2 %v697_v58 }
  0x85   : > { %589 = vmatmul.f32.gmra.mxu2 %v495_v55  ;;  %654 = vmatmul.f32.gmra.mxu3 %v496_v56 }
  0x86   : > { %717 = vmatpush.msrb.mxu2 %v696_v59  ;;  %v803_v59 = vld [vmem:[#allocation7 + $0x68] sm:$0xff] }
  0x87   : > { %812 = vmatpush.msrb.mxu3 %v803_v59 }
  0x88   : > { %718 = vmatpush.msrb.mxu2 %v695_v0 }
  0x8a   : > { %719 = vmatpush.msrb.mxu2 %v694_v1 }
  0x8b   : > { %568 = vmatmul.f32.gmra.mxu0 %v481_v39 }
  0x8c   : > { %633 = vmatmul.f32.gmra.mxu1 %v482_v40  ;;  %720 = vmatpush.msrb.mxu2 %v693_v2 }
  0x8d   : > { %592 = vmatmul.f32.gmra.mxu2 %v497_v62  ;;  %657 = vmatmul.f32.gmra.mxu3 %v498_v63 }
  0x8e   : > { %721 = vmatpush.msrb.mxu2 %v692_v7 }
  0x90   : > { %722 = vmatpush.msrb.mxu2 %v691_v8 }
  0x92   : > { %723 = vmatpush.msrb.mxu2 %v690_v9 }
  0x93   : > { %571 = vmatmul.f32.gmra.mxu0 %v483_v46 }
  0x94   : > { %636 = vmatmul.f32.gmra.mxu1 %v484_v47  ;;  %724 = vmatpush.msrb.mxu2 %v689_v16 }
  0x95   : > { %595 = vmatmul.f32.gmra.mxu2 %v499_v5  ;;  %660 = vmatmul.f32.gmra.mxu3 %v500_v6  ;;  %v801_v5 = vld [vmem:[#allocation7 + $0x58] sm:$0xff]  ;;  %v800_v6 = vld [vmem:[#allocation7 + $0x50] sm:$0xff] }
  0x9b   : > { %574 = vmatmul.f32.gmra.mxu0 %v485_v53 }
  0x9c   : > { %639 = vmatmul.f32.gmra.mxu1 %v486_v54 }
  0x9d   : > { %598 = vmatmul.f32.gmra.mxu2 %v501_v10  ;;  %663 = vmatmul.f32.gmra.mxu3 %v502_v11  ;;  %v799_v11 = vld [vmem:[#allocation7 + $0x48] sm:$0xff] }
  0xa3   : > { %577 = vmatmul.f32.gmra.mxu0 %v487_v60  ;;  %v802_v60 = vld [vmem:[#allocation7 + $0x60] sm:$0xff] }
  0xa4   : > { %642 = vmatmul.f32.gmra.mxu1 %v488_v61  ;;  %813 = vmatpush.msrb.mxu3 %v802_v60 }
  0xa5   : > { %601 = vmatmul.f32.gmra.mxu2 %v503_v12  ;;  %666 = vmatmul.f32.gmra.mxu3 %v504_v13  ;;  %v798_v12 = vld [vmem:[#allocation7 + $0x40] sm:$0xff] }
  0xa6   : > { %814 = vmatpush.msrb.mxu3 %v801_v5  ;;  %v906_v5 = vld [vmem:[#allocation8 + $0x78] sm:$0xff] }
  0xa7   : > { %911 = vmatpush.msrb.mxu0 %v906_v5 }
  0xa8   : > { %815 = vmatpush.msrb.mxu3 %v800_v6 }
  0xaa   : > { %816 = vmatpush.msrb.mxu3 %v799_v11 }
  0xab   : > { %580 = vmatmul.f32.gmra.mxu0 %v489_v3 }
  0xac   : > { %645 = vmatmul.f32.gmra.mxu1 %v490_v4  ;;  %817 = vmatpush.msrb.mxu3 %v798_v12 }
  0xad   : > { %604 = vmatmul.f32.gmra.mxu2 %v505_v14  ;;  %669 = vmatmul.f32.gmra.mxu3 %v506_v15 }
  0xf0   : > { %v560_v18 = vpop.f32.mrf.mxu0 }
  0xf1   : > { %v625_v19 = vpop.f32.mrf.mxu1  ;;  %v561_v20 = vadd.f32 %v2162_v17, %v560_v18 }
  0xf3   : > { %v626_v21 = vadd.f32 %v625_v19, %v561_v20  ;;  %v797_v19 = vld [vmem:[#allocation7 + $0x38] sm:$0xff]  ;;  %v796_v20 = vld [vmem:[#allocation7 + $0x30] sm:$0xff] }
  0xf4   : > { %818 = vmatpush.msrb.mxu3 %v797_v19 }
  0xf5   : > { %v673_v22 = vmax.f32 %v626_v21, 0.0 }
  0xf6   : > { %819 = vmatpush.msrb.mxu3 %v796_v20  ;;  %v901_v20 = vld [vmem:[#allocation8 + $0x50] sm:$0xff] }
  0xf7   : > { %725 = vmatmul.f32.vlgmr.msrb.gmra.mxu2 %v673_v22 }
  0xf8   : > { %v563_v23 = vpop.f32.mrf.mxu0  ;;  %v584_v46 = vpop.f32.mrf.mxu2 }
  0xf9   : > { %v628_v24 = vpop.f32.mrf.mxu1  ;;  %v564_v25 = vadd.f32 %v2162_v17, %v563_v23  ;;  %v649_v49 = vpop.f32.mrf.mxu3  ;;  %v585_v1 = vadd.f32 %v2162_v17, %v584_v46 }
  0xfb   : > { %v629_v26 = vadd.f32 %v628_v24, %v564_v25  ;;  %v650_v4 = vadd.f32 %v649_v49, %v585_v1 }
  0xfd   : > { %v674_v27 = vmax.f32 %v629_v26, 0.0  ;;  %v681_v8 = vmax.f32 %v650_v4, 0.0  ;;  %v795_v26 = vld [vmem:[#allocation7 + $0x28] sm:$0xff] }
  0xfe   : > { %820 = vmatpush.msrb.mxu3 %v795_v26  ;;  %v898_v26 = vld [vmem:[#allocation8 + $0x38] sm:$0xff] }
  0xff   : > { %728 = vmatmul.f32.gmra.mxu2 %v674_v27  ;;  %v794_v27 = vld [vmem:[#allocation7 + $0x20] sm:$0xff] }
 0x100   : > { %v566_v28 = vpop.f32.mrf.mxu0  ;;  %v587_v56 = vpop.f32.mrf.mxu2  ;;  %821 = vmatpush.msrb.mxu3 %v794_v27 }
 0x101   : > { %v631_v29 = vpop.f32.mrf.mxu1  ;;  %v567_v30 = vadd.f32 %v2162_v17, %v566_v28  ;;  %v652_v58 = vpop.f32.mrf.mxu3  ;;  %v588_v9 = vadd.f32 %v2162_v17, %v587_v56 }
 0x103   : > { %v632_v31 = vadd.f32 %v631_v29, %v567_v30  ;;  %v653_v10 = vadd.f32 %v652_v58, %v588_v9  ;;  %v905_v9 = vld [vmem:[#allocation8 + $0x70] sm:$0xff] }
 0x104   : > { %912 = vmatpush.msrb.mxu0 %v905_v9 }
 0x105   : > { %v675_v32 = vmax.f32 %v632_v31, 0.0  ;;  %v682_v14 = vmax.f32 %v653_v10, 0.0  ;;  %v904_v10 = vld [vmem:[#allocation8 + $0x68] sm:$0xff] }
 0x106   : > { %913 = vmatpush.msrb.mxu0 %v904_v10 }
 0x107   : > { %731 = vmatmul.f32.gmra.mxu2 %v675_v32  ;;  %v793_v32 = vld [vmem:[#allocation7 + $0x18] sm:$0xff] }
 0x108   : > { %v569_v33 = vpop.f32.mrf.mxu0  ;;  %v590_v3 = vpop.f32.mrf.mxu2  ;;  %822 = vmatpush.msrb.mxu3 %v793_v32 }
 0x109   : > { %v634_v34 = vpop.f32.mrf.mxu1  ;;  %v570_v35 = vadd.f32 %v2162_v17, %v569_v33  ;;  %v655_v7 = vpop.f32.mrf.mxu3  ;;  %v591_v15 = vadd.f32 %v2162_v17, %v590_v3  ;;  %v792_v33 = vld [vmem:[#allocation7 + $0x10] sm:$0xff] }
 0x10a   : > { %823 = vmatpush.msrb.mxu3 %v792_v33 }
 0x10b   : > { %v635_v36 = vadd.f32 %v634_v34, %v570_v35  ;;  %v656_v18 = vadd.f32 %v655_v7, %v591_v15  ;;  %v791_v35 = vld [vmem:[#allocation7 + $0x8] sm:$0xff]  ;;  %v902_v15 = vld [vmem:[#allocation8 + $0x58] sm:$0xff] }
 0x10c   : > { %824 = vmatpush.msrb.mxu3 %v791_v35  ;;  %v895_v35 = vld [vmem:[#allocation8 + $0x20] sm:$0xff] }
 0x10d   : > { %v676_v37 = vmax.f32 %v635_v36, 0.0  ;;  %v683_v22 = vmax.f32 %v656_v18, 0.0 }
 0x10f   : > { %734 = vmatmul.f32.gmra.mxu2 %v676_v37 }
 0x110   : > { %v572_v38 = vpop.f32.mrf.mxu0  ;;  %v593_v13 = vpop.f32.mrf.mxu2 }
 0x111   : > { %v637_v39 = vpop.f32.mrf.mxu1  ;;  %v573_v40 = vadd.f32 %v2162_v17, %v572_v38  ;;  %v658_v16 = vpop.f32.mrf.mxu3  ;;  %v594_v23 = vadd.f32 %v2162_v17, %v593_v13 }
 0x113   : > { %v638_v41 = vadd.f32 %v637_v39, %v573_v40  ;;  %v659_v25 = vadd.f32 %v658_v16, %v594_v23 }
 0x115   : > { %v677_v42 = vmax.f32 %v638_v41, 0.0  ;;  %v684_v28 = vmax.f32 %v659_v25, 0.0  ;;  %v899_v25 = vld [vmem:[#allocation8 + $0x40] sm:$0xff] }
 0x117   : > { %737 = vmatmul.f32.gmra.mxu2 %v677_v42 }
 0x118   : > { %v575_v43 = vpop.f32.mrf.mxu0  ;;  %v596_v21 = vpop.f32.mrf.mxu2 }
 0x119   : > { %v640_v44 = vpop.f32.mrf.mxu1  ;;  %v576_v45 = vadd.f32 %v2162_v17, %v575_v43  ;;  %v661_v24 = vpop.f32.mrf.mxu3  ;;  %v597_v29 = vadd.f32 %v2162_v17, %v596_v21  ;;  %v790_v43 = vld [vmem:[#allocation7] sm:$0xff]  ;;  %v900_v21 = vld [vmem:[#allocation8 + $0x48] sm:$0xff] }
 0x11a   : > { %825 = vmatpush.msrb.mxu3 %v790_v43 }
 0x11b   : > { %v641_v47 = vadd.f32 %v640_v44, %v576_v45  ;;  %v662_v31 = vadd.f32 %v661_v24, %v597_v29 }
 0x11d   : > { %v678_v48 = vmax.f32 %v641_v47, 0.0  ;;  %v685_v36 = vmax.f32 %v662_v31, 0.0  ;;  %v896_v31 = vld [vmem:[#allocation8 + $0x28] sm:$0xff] }
 0x11f   : > { %740 = vmatmul.f32.gmra.mxu2 %v678_v48 }
 0x120   : > { %v578_v52 = vpop.f32.mrf.mxu0  ;;  %v599_v30 = vpop.f32.mrf.mxu2 }
 0x121   : > { %v643_v53 = vpop.f32.mrf.mxu1  ;;  %v579_v54 = vadd.f32 %v2162_v17, %v578_v52  ;;  %v664_v34 = vpop.f32.mrf.mxu3  ;;  %v600_v37 = vadd.f32 %v2162_v17, %v599_v30  ;;  %v897_v30 = vld [vmem:[#allocation8 + $0x30] sm:$0xff] }
 0x123   : > { %v644_v55 = vadd.f32 %v643_v53, %v579_v54  ;;  %v665_v39 = vadd.f32 %v664_v34, %v600_v37  ;;  %v893_v37 = vld [vmem:[#allocation8 + $0x10] sm:$0xff] }
 0x125   : > { %v679_v57 = vmax.f32 %v644_v55, 0.0  ;;  %v686_v41 = vmax.f32 %v665_v39, 0.0 }
 0x127   : > { %743 = vmatmul.f32.gmra.mxu2 %v679_v57 }
 0x128   : > { %v581_v61 = vpop.f32.mrf.mxu0  ;;  %v602_v38 = vpop.f32.mrf.mxu2 }
 0x129   : > { %v646_v62 = vpop.f32.mrf.mxu1  ;;  %v582_v63 = vadd.f32 %v2162_v17, %v581_v61  ;;  %v667_v40 = vpop.f32.mrf.mxu3  ;;  %v603_v42 = vadd.f32 %v2162_v17, %v602_v38  ;;  %v892_v38 = vld [vmem:[#allocation8 + $0x8] sm:$0xff] }
 0x12b   : > { %v647_v0 = vadd.f32 %v646_v62, %v582_v63  ;;  %v668_v44 = vadd.f32 %v667_v40, %v603_v42 }
 0x12d   : > { %v680_v2 = vmax.f32 %v647_v0, 0.0  ;;  %v687_v46 = vmax.f32 %v668_v44, 0.0 }
 0x12f   : > { %746 = vmatmul.f32.gmra.mxu2 %v680_v2 }
 0x130   : > { %v605_v45 = vpop.f32.mrf.mxu2 }
 0x131   : > { %v606_v47 = vadd.f32 %v2162_v17, %v605_v45  ;;  %v670_v48 = vpop.f32.mrf.mxu3  ;;  %v891_v45 = vld [vmem:[#allocation8] sm:$0xff] }
 0x133   : > { %v671_v49 = vadd.f32 %v670_v48, %v606_v47 }
 0x135   : > { %v688_v50 = vmax.f32 %v671_v49, 0.0 }
 0x137   : > { %749 = vmatmul.f32.gmra.mxu2 %v681_v8 }
 0x13f   : > { %752 = vmatmul.f32.gmra.mxu2 %v682_v14  ;;  %v903_v14 = vld [vmem:[#allocation8 + $0x60] sm:$0xff] }
 0x140   : > { %914 = vmatpush.msrb.mxu0 %v903_v14 }
 0x142   : > { %915 = vmatpush.msrb.mxu0 %v902_v15 }
 0x144   : > { %916 = vmatpush.msrb.mxu0 %v901_v20 }
 0x146   : > { %917 = vmatpush.msrb.mxu0 %v900_v21 }
 0x147   : > { %755 = vmatmul.f32.gmra.mxu2 %v683_v22 }
 0x148   : > { %918 = vmatpush.msrb.mxu0 %v899_v25 }
 0x14a   : > { %919 = vmatpush.msrb.mxu0 %v898_v26 }
 0x14c   : > { %920 = vmatpush.msrb.mxu0 %v897_v30 }
 0x14e   : > { %921 = vmatpush.msrb.mxu0 %v896_v31 }
 0x14f   : > { %758 = vmatmul.f32.gmra.mxu2 %v684_v28 }
 0x150   : > { %922 = vmatpush.msrb.mxu0 %v895_v35 }
 0x157   : > { %761 = vmatmul.f32.gmra.mxu2 %v685_v36  ;;  %v894_v36 = vld [vmem:[#allocation8 + $0x18] sm:$0xff] }
 0x158   : > { %923 = vmatpush.msrb.mxu0 %v894_v36 }
 0x15a   : > { %924 = vmatpush.msrb.mxu0 %v893_v37 }
 0x15c   : > { %925 = vmatpush.msrb.mxu0 %v892_v38  ;;  %v994_v38 = vld [vmem:[%s2424_s9 + $0x10] sm:$0xff] }
 0x15e   : > { %926 = vmatpush.msrb.mxu0 %v891_v45 }
 0x15f   : > { %764 = vmatmul.f32.gmra.mxu2 %v686_v41 }
 0x167   : > { %767 = vmatmul.f32.gmra.mxu2 %v687_v46 }
 0x16f   : > { %770 = vmatmul.f32.gmra.mxu2 %v688_v50 }
 0x17a   : > { %v726_v52 = vpop.f32.mrf.mxu2 }
 0x17b   : > { %v727_v53 = vadd.f32 %v2183_v51, %v726_v52 }
 0x17d   : > { %v774_v54 = vmax.f32 %v727_v53, 0.0  ;;  %v2204_v53 = vld [vmem:[%s2421_s6] ss:$0 sm:$0xff] }
 0x17f   : > { %826 = vmatmul.f32.vlgmr.msrb.gmra.mxu3 %v774_v54 }
 0x182   : > { %v729_v55 = vpop.f32.mrf.mxu2 }
 0x183   : > { %v730_v56 = vadd.f32 %v2183_v51, %v729_v55 }
 0x185   : > { %v775_v57 = vmax.f32 %v730_v56, 0.0 }
 0x187   : > { %829 = vmatmul.f32.gmra.mxu3 %v775_v57 }
 0x18a   : > { %v732_v17 = vpop.f32.mrf.mxu2 }
 0x18b   : > { %v733_v58 = vadd.f32 %v2183_v51, %v732_v17 }
 0x18d   : > { %v776_v59 = vmax.f32 %v733_v58, 0.0 }
 0x18f   : > { %832 = vmatmul.f32.gmra.mxu3 %v776_v59 }
 0x192   : > { %v735_v60 = vpop.f32.mrf.mxu2 }
 0x193   : > { %v736_v61 = vadd.f32 %v2183_v51, %v735_v60 }
 0x195   : > { %v777_v62 = vmax.f32 %v736_v61, 0.0 }
 0x197   : > { %835 = vmatmul.f32.gmra.mxu3 %v777_v62 }
 0x19a   : > { %v738_v63 = vpop.f32.mrf.mxu2 }
 0x19b   : > { %v739_v0 = vadd.f32 %v2183_v51, %v738_v63 }
 0x19d   : > { %v778_v1 = vmax.f32 %v739_v0, 0.0 }
 0x19f   : > { %838 = vmatmul.f32.gmra.mxu3 %v778_v1 }
 0x1a2   : > { %v741_v2 = vpop.f32.mrf.mxu2 }
 0x1a3   : > { %v742_v3 = vadd.f32 %v2183_v51, %v741_v2 }
 0x1a5   : > { %v779_v4 = vmax.f32 %v742_v3, 0.0  ;;  %v1007_v3 = vld [vmem:[%s2424_s9 + $0x78] sm:$0xff] }
 0x1a6   : > { %1012 = vmatpush.msrb.mxu1 %v1007_v3 }
 0x1a7   : > { %841 = vmatmul.f32.gmra.mxu3 %v779_v4 }
 0x1aa   : > { %v744_v6 = vpop.f32.mrf.mxu2 }
 0x1ab   : > { %v745_v7 = vadd.f32 %v2183_v51, %v744_v6 }
 0x1ad   : > { %v780_v8 = vmax.f32 %v745_v7, 0.0  ;;  %v1006_v7 = vld [vmem:[%s2424_s9 + $0x70] sm:$0xff] }
 0x1ae   : > { %1013 = vmatpush.msrb.mxu1 %v1006_v7 }
 0x1af   : > { %844 = vmatmul.f32.gmra.mxu3 %v780_v8  ;;  %v1005_v8 = vld [vmem:[%s2424_s9 + $0x68] sm:$0xff] }
 0x1b0   : > { %1014 = vmatpush.msrb.mxu1 %v1005_v8 }
 0x1b2   : > { %v747_v11 = vpop.f32.mrf.mxu2 }
 0x1b3   : > { %v748_v12 = vadd.f32 %v2183_v51, %v747_v11 }
 0x1b5   : > { %v781_v13 = vmax.f32 %v748_v12, 0.0  ;;  %v1004_v12 = vld [vmem:[%s2424_s9 + $0x60] sm:$0xff] }
 0x1b6   : > { %1015 = vmatpush.msrb.mxu1 %v1004_v12 }
 0x1b7   : > { %847 = vmatmul.f32.gmra.mxu3 %v781_v13  ;;  %v1003_v13 = vld [vmem:[%s2424_s9 + $0x58] sm:$0xff] }
 0x1b8   : > { %1016 = vmatpush.msrb.mxu1 %v1003_v13 }
 0x1ba   : > { %v750_v16 = vpop.f32.mrf.mxu2 }
 0x1bb   : > { %v751_v18 = vadd.f32 %v2183_v51, %v750_v16 }
 0x1bd   : > { %v782_v19 = vmax.f32 %v751_v18, 0.0  ;;  %v1002_v18 = vld [vmem:[%s2424_s9 + $0x50] sm:$0xff] }
 0x1be   : > { %1017 = vmatpush.msrb.mxu1 %v1002_v18 }
 0x1bf   : > { %850 = vmatmul.f32.gmra.mxu3 %v782_v19  ;;  %v1001_v19 = vld [vmem:[%s2424_s9 + $0x48] sm:$0xff] }
 0x1c0   : > { %1018 = vmatpush.msrb.mxu1 %v1001_v19 }
 0x1c2   : > { %v753_v22 = vpop.f32.mrf.mxu2 }
 0x1c3   : > { %v754_v23 = vadd.f32 %v2183_v51, %v753_v22 }
 0x1c5   : > { %v783_v24 = vmax.f32 %v754_v23, 0.0  ;;  %v1000_v23 = vld [vmem:[%s2424_s9 + $0x40] sm:$0xff] }
 0x1c6   : > { %1019 = vmatpush.msrb.mxu1 %v1000_v23 }
 0x1c7   : > { %853 = vmatmul.f32.gmra.mxu3 %v783_v24  ;;  %v999_v24 = vld [vmem:[%s2424_s9 + $0x38] sm:$0xff] }
 0x1c8   : > { %1020 = vmatpush.msrb.mxu1 %v999_v24 }
 0x1ca   : > { %v756_v27 = vpop.f32.mrf.mxu2 }
 0x1cb   : > { %v757_v28 = vadd.f32 %v2183_v51, %v756_v27 }
 0x1cd   : > { %v784_v29 = vmax.f32 %v757_v28, 0.0  ;;  %v998_v28 = vld [vmem:[%s2424_s9 + $0x30] sm:$0xff] }
 0x1ce   : > { %1021 = vmatpush.msrb.mxu1 %v998_v28 }
 0x1cf   : > { %856 = vmatmul.f32.gmra.mxu3 %v784_v29  ;;  %v997_v29 = vld [vmem:[%s2424_s9 + $0x28] sm:$0xff] }
 0x1d0   : > { %1022 = vmatpush.msrb.mxu1 %v997_v29 }
 0x1d2   : > { %v759_v32 = vpop.f32.mrf.mxu2 }
 0x1d3   : > { %v760_v33 = vadd.f32 %v2183_v51, %v759_v32 }
 0x1d5   : > { %v785_v34 = vmax.f32 %v760_v33, 0.0  ;;  %v996_v33 = vld [vmem:[%s2424_s9 + $0x20] sm:$0xff] }
 0x1d6   : > { %1023 = vmatpush.msrb.mxu1 %v996_v33 }
 0x1d7   : > { %859 = vmatmul.f32.gmra.mxu3 %v785_v34  ;;  %v995_v34 = vld [vmem:[%s2424_s9 + $0x18] sm:$0xff] }
 0x1d8   : > { %1024 = vmatpush.msrb.mxu1 %v995_v34 }
 0x1da   : > { %v762_v39 = vpop.f32.mrf.mxu2  ;;  %1025 = vmatpush.msrb.mxu1 %v994_v38  ;;  %v1622_v38 = vld [vmem:[#allocation2] ss:$0 sm:$0xff] }
 0x1db   : > { %v763_v40 = vadd.f32 %v2183_v51, %v762_v39  ;;  %v993_v39 = vld [vmem:[%s2424_s9 + $0x8] sm:$0xff] }
 0x1dc   : > { %1026 = vmatpush.msrb.mxu1 %v993_v39 }
 0x1dd   : > { %v786_v41 = vmax.f32 %v763_v40, 0.0 }
 0x1df   : > { %862 = vmatmul.f32.gmra.mxu3 %v786_v41 }
 0x1e2   : > { %v765_v42 = vpop.f32.mrf.mxu2 }
 0x1e3   : > { %v766_v43 = vadd.f32 %v2183_v51, %v765_v42 }
 0x1e5   : > { %v787_v44 = vmax.f32 %v766_v43, 0.0  ;;  %v992_v43 = vld [vmem:[%s2424_s9] sm:$0xff] }
 0x1e6   : > { %1027 = vmatpush.msrb.mxu1 %v992_v43 }
 0x1e7   : > { %865 = vmatmul.f32.gmra.mxu3 %v787_v44 }
 0x1ea   : > { %v768_v46 = vpop.f32.mrf.mxu2 }
 0x1eb   : > { %v769_v47 = vadd.f32 %v2183_v51, %v768_v46 }
 0x1ed   : > { %v788_v48 = vmax.f32 %v769_v47, 0.0 }
 0x1ef   : > { %868 = vmatmul.f32.gmra.mxu3 %v788_v48 }
 0x1f2   : > { %v771_v49 = vpop.f32.mrf.mxu2 }
 0x1f3   : > { %v772_v50 = vadd.f32 %v2183_v51, %v771_v49 }
 0x1f5   : > { %v789_v52 = vmax.f32 %v772_v50, 0.0 }
 0x1f7   : > { %871 = vmatmul.f32.gmra.mxu3 %v789_v52 }
 0x202   : > { %v827_v54 = vpop.f32.mrf.mxu3 }
 0x203   : > { %v828_v55 = vadd.f32 %v2204_v53, %v827_v54 }
 0x205   : > { %v875_v56 = vmax.f32 %v828_v55, 0.0  ;;  %v1621_v55 = vld [vmem:[%s2423_s8] ss:$0 sm:$0xff] }
 0x207   : > { %927 = vmatmul.f32.vlgmr.msrb.gmra.mxu0 %v875_v56 }
 0x20a   : > { %v830_v57 = vpop.f32.mrf.mxu3 }
 0x20b   : > { %v831_v17 = vadd.f32 %v2204_v53, %v830_v57 }
 0x20d   : > { %v876_v58 = vmax.f32 %v831_v17, 0.0 }
 0x20f   : > { %930 = vmatmul.f32.gmra.mxu0 %v876_v58 }
 0x212   : > { %v833_v59 = vpop.f32.mrf.mxu3 }
 0x213   : > { %v834_v51 = vadd.f32 %v2204_v53, %v833_v59 }
 0x215   : > { %v877_v60 = vmax.f32 %v834_v51, 0.0 }
 0x217   : > { %933 = vmatmul.f32.gmra.mxu0 %v877_v60 }
 0x21a   : > { %v836_v61 = vpop.f32.mrf.mxu3 }
 0x21b   : > { %v837_v62 = vadd.f32 %v2204_v53, %v836_v61 }
 0x21d   : > { %v878_v63 = vmax.f32 %v837_v62, 0.0 }
 0x21f   : > { %936 = vmatmul.f32.gmra.mxu0 %v878_v63 }
 0x222   : > { %v839_v0 = vpop.f32.mrf.mxu3 }
 0x223   : > { %v840_v1 = vadd.f32 %v2204_v53, %v839_v0 }
 0x225   : > { %v879_v2 = vmax.f32 %v840_v1, 0.0 }
 0x227   : > { %939 = vmatmul.f32.gmra.mxu0 %v879_v2 }
 0x22a   : > { %v842_v4 = vpop.f32.mrf.mxu3 }
 0x22b   : > { %v843_v5 = vadd.f32 %v2204_v53, %v842_v4 }
 0x22d   : > { %v880_v6 = vmax.f32 %v843_v5, 0.0 }
 0x22f   : > { %942 = vmatmul.f32.gmra.mxu0 %v880_v6 }
 0x232   : > { %v845_v9 = vpop.f32.mrf.mxu3 }
 0x233   : > { %v846_v10 = vadd.f32 %v2204_v53, %v845_v9 }
 0x235   : > { %v881_v11 = vmax.f32 %v846_v10, 0.0 }
 0x237   : > { %945 = vmatmul.f32.gmra.mxu0 %v881_v11 }
 0x23a   : > { %v848_v14 = vpop.f32.mrf.mxu3 }
 0x23b   : > { %v849_v15 = vadd.f32 %v2204_v53, %v848_v14 }
 0x23d   : > { %v882_v16 = vmax.f32 %v849_v15, 0.0 }
 0x23f   : > { %948 = vmatmul.f32.gmra.mxu0 %v882_v16 }
 0x242   : > { %v851_v20 = vpop.f32.mrf.mxu3 }
 0x243   : > { %v852_v21 = vadd.f32 %v2204_v53, %v851_v20 }
 0x245   : > { %v883_v22 = vmax.f32 %v852_v21, 0.0 }
 0x247   : > { %951 = vmatmul.f32.gmra.mxu0 %v883_v22 }
 0x24a   : > { %v854_v25 = vpop.f32.mrf.mxu3 }
 0x24b   : > { %v855_v26 = vadd.f32 %v2204_v53, %v854_v25 }
 0x24d   : > { %v884_v27 = vmax.f32 %v855_v26, 0.0 }
 0x24f   : > { %954 = vmatmul.f32.gmra.mxu0 %v884_v27 }
 0x252   : > { %v857_v30 = vpop.f32.mrf.mxu3 }
 0x253   : > { %v858_v31 = vadd.f32 %v2204_v53, %v857_v30 }
 0x255   : > { %v885_v32 = vmax.f32 %v858_v31, 0.0 }
 0x257   : > { %957 = vmatmul.f32.gmra.mxu0 %v885_v32 }
 0x25a   : > { %v860_v35 = vpop.f32.mrf.mxu3 }
 0x25b   : > { %v861_v36 = vadd.f32 %v2204_v53, %v860_v35 }
 0x25d   : > { %v886_v37 = vmax.f32 %v861_v36, 0.0 }
 0x25f   : > { %960 = vmatmul.f32.gmra.mxu0 %v886_v37 }
 0x262   : > { %v863_v40 = vpop.f32.mrf.mxu3 }
 0x263   : > { %v864_v41 = vadd.f32 %v2204_v53, %v863_v40 }
 0x265   : > { %v887_v42 = vmax.f32 %v864_v41, 0.0 }
 0x267   : > { %963 = vmatmul.f32.gmra.mxu0 %v887_v42 }
 0x26a   : > { %v866_v44 = vpop.f32.mrf.mxu3 }
 0x26b   : > { %v867_v45 = vadd.f32 %v2204_v53, %v866_v44 }
 0x26d   : > { %v888_v46 = vmax.f32 %v867_v45, 0.0 }
 0x26f   : > { %966 = vmatmul.f32.gmra.mxu0 %v888_v46 }
 0x272   : > { %v869_v47 = vpop.f32.mrf.mxu3 }
 0x273   : > { %v870_v48 = vadd.f32 %v2204_v53, %v869_v47 }
 0x275   : > { %v889_v49 = vmax.f32 %v870_v48, 0.0 }
 0x277   : > { %969 = vmatmul.f32.gmra.mxu0 %v889_v49 }
 0x27a   : > { %v872_v50 = vpop.f32.mrf.mxu3 }
 0x27b   : > { %v873_v52 = vadd.f32 %v2204_v53, %v872_v50 }
 0x27d   : > { %v890_v54 = vmax.f32 %v873_v52, 0.0 }
 0x27f   : > { %972 = vmatmul.f32.gmra.mxu0 %v890_v54 }
 0x284   : > { %v928_v56 = vpop.f32.mrf.mxu0 }
 0x285   : > { %v929_v57 = vadd.f32 %v1621_v55, %v928_v56 }
 0x287   : > { %v976_v17 = vmax.f32 %v929_v57, 0.0 }
 0x289   : > { %1028 = vmatmul.f32.vlgmr.msrb.gmra.mxu1 %v976_v17 }
 0x28c   : > { %v931_v58 = vpop.f32.mrf.mxu0 }
 0x28d   : > { %v932_v59 = vadd.f32 %v1621_v55, %v931_v58 }
 0x28f   : > { %v977_v51 = vmax.f32 %v932_v59, 0.0 }
 0x291   : > { %1031 = vmatmul.f32.gmra.mxu1 %v977_v51 }
 0x294   : > { %v934_v60 = vpop.f32.mrf.mxu0 }
 0x295   : > { %v935_v61 = vadd.f32 %v1621_v55, %v934_v60 }
 0x297   : > { %v978_v62 = vmax.f32 %v935_v61, 0.0 }
 0x299   : > { %1034 = vmatmul.f32.gmra.mxu1 %v978_v62 }
 0x29c   : > { %v937_v63 = vpop.f32.mrf.mxu0 }
 0x29d   : > { %v938_v53 = vadd.f32 %v1621_v55, %v937_v63 }
 0x29f   : > { %v979_v0 = vmax.f32 %v938_v53, 0.0 }
 0x2a1   : > { %1037 = vmatmul.f32.gmra.mxu1 %v979_v0 }
 0x2a4   : > { %v940_v1 = vpop.f32.mrf.mxu0 }
 0x2a5   : > { %v941_v2 = vadd.f32 %v1621_v55, %v940_v1 }
 0x2a7   : > { %v980_v3 = vmax.f32 %v941_v2, 0.0 }
 0x2a9   : > { %1040 = vmatmul.f32.gmra.mxu1 %v980_v3 }
 0x2ac   : > { %v943_v4 = vpop.f32.mrf.mxu0 }
 0x2ad   : > { %v944_v5 = vadd.f32 %v1621_v55, %v943_v4 }
 0x2af   : > { %v981_v6 = vmax.f32 %v944_v5, 0.0 }
 0x2b1   : > { %1043 = vmatmul.f32.gmra.mxu1 %v981_v6 }
 0x2b4   : > { %v946_v7 = vpop.f32.mrf.mxu0 }
 0x2b5   : > { %v947_v8 = vadd.f32 %v1621_v55, %v946_v7 }
 0x2b7   : > { %v982_v9 = vmax.f32 %v947_v8, 0.0 }
 0x2b9   : > { %1046 = vmatmul.f32.gmra.mxu1 %v982_v9 }
 0x2bc   : > { %v949_v10 = vpop.f32.mrf.mxu0 }
 0x2bd   : > { %v950_v11 = vadd.f32 %v1621_v55, %v949_v10 }
 0x2bf   : > { %v983_v12 = vmax.f32 %v950_v11, 0.0 }
 0x2c1   : > { %1049 = vmatmul.f32.gmra.mxu1 %v983_v12 }
 0x2c4   : > { %v952_v13 = vpop.f32.mrf.mxu0 }
 0x2c5   : > { %v953_v14 = vadd.f32 %v1621_v55, %v952_v13 }
 0x2c7   : > { %v984_v15 = vmax.f32 %v953_v14, 0.0 }
 0x2c9   : > { %1052 = vmatmul.f32.gmra.mxu1 %v984_v15 }
 0x2cc   : > { %v955_v16 = vpop.f32.mrf.mxu0 }
 0x2cd   : > { %v956_v18 = vadd.f32 %v1621_v55, %v955_v16 }
 0x2cf   : > { %v985_v19 = vmax.f32 %v956_v18, 0.0 }
 0x2d1   : > { %1055 = vmatmul.f32.gmra.mxu1 %v985_v19 }
 0x2d4   : > { %v958_v20 = vpop.f32.mrf.mxu0 }
 0x2d5   : > { %v959_v21 = vadd.f32 %v1621_v55, %v958_v20 }
 0x2d7   : > { %v986_v22 = vmax.f32 %v959_v21, 0.0 }
 0x2d9   : > { %1058 = vmatmul.f32.gmra.mxu1 %v986_v22 }
 0x2dc   : > { %v961_v23 = vpop.f32.mrf.mxu0 }
 0x2dd   : > { %v962_v24 = vadd.f32 %v1621_v55, %v961_v23 }
 0x2df   : > { %v987_v25 = vmax.f32 %v962_v24, 0.0 }
 0x2e1   : > { %1061 = vmatmul.f32.gmra.mxu1 %v987_v25 }
 0x2e4   : > { %v964_v26 = vpop.f32.mrf.mxu0 }
 0x2e5   : > { %v965_v27 = vadd.f32 %v1621_v55, %v964_v26 }
 0x2e7   : > { %v988_v28 = vmax.f32 %v965_v27, 0.0 }
 0x2e9   : > { %1064 = vmatmul.f32.gmra.mxu1 %v988_v28 }
 0x2ec   : > { %v967_v29 = vpop.f32.mrf.mxu0 }
 0x2ed   : > { %v968_v30 = vadd.f32 %v1621_v55, %v967_v29 }
 0x2ef   : > { %v989_v31 = vmax.f32 %v968_v30, 0.0 }
 0x2f1   : > { %1067 = vmatmul.f32.gmra.mxu1 %v989_v31 }
 0x2f4   : > { %v970_v32 = vpop.f32.mrf.mxu0 }
 0x2f5   : > { %v971_v33 = vadd.f32 %v1621_v55, %v970_v32 }
 0x2f7   : > { %v990_v34 = vmax.f32 %v971_v33, 0.0 }
 0x2f9   : > { %1070 = vmatmul.f32.gmra.mxu1 %v990_v34 }
 0x2fc   : > { %v973_v35 = vpop.f32.mrf.mxu0 }
 0x2fd   : > { %v974_v36 = vadd.f32 %v1621_v55, %v973_v35 }
 0x2ff   : > { %v991_v37 = vmax.f32 %v974_v36, 0.0 }
 0x301   : > { %1073 = vmatmul.f32.gmra.mxu1 %v991_v37 }
 0x306   : > { %v1029_v39 = vpop.f32.mrf.mxu1 }
 0x307   : > { %v1030_v40 = vadd.f32 %v1622_v38, %v1029_v39 }
 0x309   : > { %1078 = vst.msk [vmem:[%s2274_s13] sm:$0xff] %vm1077_vm0, %v1030_v40 }
 0x30e   : > { %v1032_v41 = vpop.f32.mrf.mxu1 }
 0x30f   : > { %v1033_v42 = vadd.f32 %v1622_v38, %v1032_v41 }
 0x311   : > { %1079 = vst.msk [vmem:[%s2274_s13 + $0x8] sm:$0xff] %vm1077_vm0, %v1033_v42 }
 0x316   : > { %v1035_v43 = vpop.f32.mrf.mxu1 }
 0x317   : > { %v1036_v44 = vadd.f32 %v1622_v38, %v1035_v43 }
 0x319   : > { %1080 = vst.msk [vmem:[%s2274_s13 + $0x10] sm:$0xff] %vm1077_vm0, %v1036_v44 }
 0x31e   : > { %v1038_v45 = vpop.f32.mrf.mxu1 }
 0x31f   : > { %v1039_v46 = vadd.f32 %v1622_v38, %v1038_v45 }
 0x321   : > { %1081 = vst.msk [vmem:[%s2274_s13 + $0x18] sm:$0xff] %vm1077_vm0, %v1039_v46 }
 0x326   : > { %v1041_v47 = vpop.f32.mrf.mxu1 }
 0x327   : > { %v1042_v48 = vadd.f32 %v1622_v38, %v1041_v47 }
 0x329   : > { %1082 = vst.msk [vmem:[%s2274_s13 + $0x20] sm:$0xff] %vm1077_vm0, %v1042_v48 }
 0x32e   : > { %v1044_v49 = vpop.f32.mrf.mxu1 }
 0x32f   : > { %v1045_v50 = vadd.f32 %v1622_v38, %v1044_v49 }
 0x331   : > { %1083 = vst.msk [vmem:[%s2274_s13 + $0x28] sm:$0xff] %vm1077_vm0, %v1045_v50 }
 0x336   : > { %v1047_v52 = vpop.f32.mrf.mxu1 }
 0x337   : > { %v1048_v54 = vadd.f32 %v1622_v38, %v1047_v52 }
 0x339   : > { %1084 = vst.msk [vmem:[%s2274_s13 + $0x30] sm:$0xff] %vm1077_vm0, %v1048_v54 }
 0x33e   : > { %v1050_v55 = vpop.f32.mrf.mxu1 }
 0x33f   : > { %v1051_v56 = vadd.f32 %v1622_v38, %v1050_v55 }
 0x341   : > { %1085 = vst.msk [vmem:[%s2274_s13 + $0x38] sm:$0xff] %vm1077_vm0, %v1051_v56 }
 0x346   : > { %v1053_v57 = vpop.f32.mrf.mxu1 }
 0x347   : > { %v1054_v17 = vadd.f32 %v1622_v38, %v1053_v57 }
 0x349   : > { %1086 = vst.msk [vmem:[%s2274_s13 + $0x40] sm:$0xff] %vm1077_vm0, %v1054_v17 }
 0x34e   : > { %v1056_v58 = vpop.f32.mrf.mxu1 }
 0x34f   : > { %v1057_v59 = vadd.f32 %v1622_v38, %v1056_v58 }
 0x351   : > { %1087 = vst.msk [vmem:[%s2274_s13 + $0x48] sm:$0xff] %vm1077_vm0, %v1057_v59 }
 0x356   : > { %v1059_v51 = vpop.f32.mrf.mxu1 }
 0x357   : > { %v1060_v60 = vadd.f32 %v1622_v38, %v1059_v51 }
 0x359   : > { %1088 = vst.msk [vmem:[%s2274_s13 + $0x50] sm:$0xff] %vm1077_vm0, %v1060_v60 }
 0x35e   : > { %v1062_v61 = vpop.f32.mrf.mxu1 }
 0x35f   : > { %v1063_v62 = vadd.f32 %v1622_v38, %v1062_v61 }
 0x361   : > { %1089 = vst.msk [vmem:[%s2274_s13 + $0x58] sm:$0xff] %vm1077_vm0, %v1063_v62 }
 0x366   : > { %v1065_v63 = vpop.f32.mrf.mxu1 }
 0x367   : > { %v1066_v53 = vadd.f32 %v1622_v38, %v1065_v63 }
 0x369   : > { %1090 = vst.msk [vmem:[%s2274_s13 + $0x60] sm:$0xff] %vm1077_vm0, %v1066_v53 }
 0x36e   : > { %v1068_v0 = vpop.f32.mrf.mxu1 }
 0x36f   : > { %v1069_v1 = vadd.f32 %v1622_v38, %v1068_v0 }
 0x371   : > { %1091 = vst.msk [vmem:[%s2274_s13 + $0x68] sm:$0xff] %vm1077_vm0, %v1069_v1 }
 0x376   : > { %v1071_v2 = vpop.f32.mrf.mxu1 }
 0x377   : > { %v1072_v3 = vadd.f32 %v1622_v38, %v1071_v2 }
 0x379   : > { %1092 = vst.msk [vmem:[%s2274_s13 + $0x70] sm:$0xff] %vm1077_vm0, %v1072_v3 }
 0x37d   : > { %1100 = sbr.rel (!%p1979_p10) target bundleno = 946 (0x3b2), region = 84 }
 0x37e   : > { %v1074_v4 = vpop.f32.mrf.mxu1 }
 0x37f   : > { %v1075_v5 = vadd.f32 %v1622_v38, %v1074_v4 }
 0x381   : > { %1093 = vst.msk [vmem:[%s2274_s13 + $0x78] sm:$0xff] %vm1077_vm0, %v1075_v5 }
 0x382   : > { %s2459_s25 = smov (!%p1103_p8, %s1102_s25), 16 }
 0x383   : > { %s1433_s30 = sshll.u32 %s2459_s25, 3 }
 0x384   : > { %p1436_p7 = scmp.eq.s32.totalorder %s1433_s30, 0 }
 0x385   : > { %s2321_s29 = sshrl.u32 (!%p1436_p7), %s2459_s25, 4 }
 0x386   : > { %1111 = sbr.rel (%p1436_p7) target bundleno = 946 (0x3b2), region = 88  ;;  %p1437_p10 = scmp.le.s32.totalorder (!%p1436_p7), %s2321_s29, 0 }
 0x38b   : > { %1336 = sbr.rel (%p1437_p10) target bundleno = 929 (0x3a1), region = 170  ;;  %s2446_s10 = smov (!%p1437_p10), %s2315_s28 }
 0x38c   : > { %s2447_s16 = smov (!%p1437_p10), %s2274_s13  ;;  %s2330_s23 = smov (!%p1437_p10), 0  }
 0x38d   : > { %s2332_s18 = smov (!%p1437_p10), 0  }
 0x390 LB: >> { %v1204_v6 = vld [vmem:[%s1834_s16] sm:$0xff]  ;;  %v1206_v7 = vld [vmem:[%s1834_s16 + $0x8] sm:$0xff]  ;;  %v1208_v8 = vld [vmem:[%s1834_s16 + $0x10] sm:$0xff]  ;;  %s1236_s27 = sadd.s32 1, %s1838_s23  ;;  %s1198_s18 = sadd.s32 1, %s1842_s18   ;;  %s1842_s18 = sphi %s2332_s18, %s1198_s18   ;;  %s1838_s23 = sphi %s2330_s23, %s2450_s23   ;;  %s1834_s16 = sphi %s2447_s16, %s2449_s16   ;;  %s1830_s10 = sphi %s2446_s10, %s2448_s10  }
 0x391   : >> { %1205 = vst [vmem:[%s1830_s10] sm:$0xff] %v1204_v6  ;;  %v1210_v9 = vld [vmem:[%s1834_s16 + $0x18] sm:$0xff]  ;;  %p1237_p9 = scmp.ge.s32.totalorder %s1236_s27, %s2321_s29  ;;  %v1212_v10 = vld [vmem:[%s1834_s16 + $0x20] sm:$0xff]  ;;  %v1214_v11 = vld [vmem:[%s1834_s16 + $0x28] sm:$0xff]  ;;  %p1197_p12 = scmp.ge.s32.totalorder %s1198_s18, %s2321_s29 }
 0x392   : >> { %1207 = vst [vmem:[%s1830_s10 + $0x8] sm:$0xff] %v1206_v7  ;;  %v1216_v12 = vld [vmem:[%s1834_s16 + $0x30] sm:$0xff]  ;;  %v1218_v13 = vld [vmem:[%s1834_s16 + $0x38] sm:$0xff]  ;;  %v1220_v14 = vld [vmem:[%s1834_s16 + $0x40] sm:$0xff] }
 0x393   : >> { %1209 = vst [vmem:[%s1830_s10 + $0x10] sm:$0xff] %v1208_v8  ;;  %s2461_s27 = smov (%p1237_p9, %s1236_s27), 0  ;;  %v1222_v15 = vld [vmem:[%s1834_s16 + $0x48] sm:$0xff]  ;;  %v1224_v16 = vld [vmem:[%s1834_s16 + $0x50] sm:$0xff]  ;;  %v1226_v18 = vld [vmem:[%s1834_s16 + $0x58] sm:$0xff] }
 0x394   : >> { %1211 = vst [vmem:[%s1830_s10 + $0x18] sm:$0xff] %v1210_v9  ;;  %s1438_s1 = sshll.u32 %s2461_s27, 7  ;;  %v1228_v19 = vld [vmem:[%s1834_s16 + $0x60] sm:$0xff]  ;;  %v1230_v20 = vld [vmem:[%s1834_s16 + $0x68] sm:$0xff]  ;;  %v1232_v21 = vld [vmem:[%s1834_s16 + $0x70] sm:$0xff]  ;;  %s2450_s23 = smov %s2461_s27 }
 0x395   : >> { %1213 = vst [vmem:[%s1830_s10 + $0x20] sm:$0xff] %v1212_v10  ;;  %s1241_s14 = scalar_lea.vmem %s2274_s13, %s1438_s1 [#allocation10]   ;;  %s1242_s19 = scalar_lea.vmem %s2315_s28, %s1438_s1   ;;  %v1234_v22 = vld [vmem:[%s1834_s16 + $0x78] sm:$0xff] }
 0x396   : >> { %1215 = vst [vmem:[%s1830_s10 + $0x28] sm:$0xff] %v1214_v11  ;;  %s2449_s16 = smov %s1241_s14 }
 0x397   : >> { %1217 = vst [vmem:[%s1830_s10 + $0x30] sm:$0xff] %v1216_v12 }
 0x398   : >> { %1219 = vst [vmem:[%s1830_s10 + $0x38] sm:$0xff] %v1218_v13 }
 0x399   : >> { %1221 = vst [vmem:[%s1830_s10 + $0x40] sm:$0xff] %v1220_v14 }
 0x39a   : >> { %1223 = vst [vmem:[%s1830_s10 + $0x48] sm:$0xff] %v1222_v15 }
 0x39b   : >> { %1225 = vst [vmem:[%s1830_s10 + $0x50] sm:$0xff] %v1224_v16 }
 0x39c   : >> { %1227 = vst [vmem:[%s1830_s10 + $0x58] sm:$0xff] %v1226_v18  ;;  %1200 = sbr.rel (!%p1197_p12) target bundleno = 912 (0x390), region = 176 }
 0x39d   : >> { %1229 = vst [vmem:[%s1830_s10 + $0x60] sm:$0xff] %v1228_v19 }
 0x39e   : >> { %1231 = vst [vmem:[%s1830_s10 + $0x68] sm:$0xff] %v1230_v20 }
 0x39f   : >> { %1233 = vst [vmem:[%s1830_s10 + $0x70] sm:$0xff] %v1232_v21 }
 0x3a0   : >> { %1235 = vst [vmem:[%s1830_s10 + $0x78] sm:$0xff] %v1234_v22  ;;  %s2448_s10 = smov %s1242_s19 }
 0x3a1 PF: > { %s2394_s22 = sand.u32 15, %s2459_s25   ;;  %s1452_s12 = sshll.u32 %s2321_s29, 7 }
 0x3a2   : > { %s1247_s26 = scalar_lea.vmem %s2274_s13, %s1452_s12 [#allocation10]   ;;  %s1249_s17 = scalar_lea.vmem %s2315_s28, %s1452_s12  }
 0x3a3   : > { %p1443_p13 = scmp.le.s32.totalorder %s2394_s22, 0 }
 0x3a4   : > { %s1844_s24 = smov (!%p1443_p13), %s1249_s17   ;;  %s1848_s15 = smov (!%p1443_p13), %s1247_s26  }
 0x3a5   : > { %1350 = sbr.rel (%p1443_p13) target bundleno = 946 (0x3b2), region = 181  ;;  %s1852_s30 = smov (!%p1443_p13), 0  }
 0x3a6   : > { %s1856_s27 = smov (!%p1443_p13), 0  }
 0x3aa LB: >> { %v1259_v23 = vld [vmem:[%s1850_s15] sm:$0xff]  ;;  %s1261_s25 = sadd.s32 1, %s1854_s30  ;;  %s1253_s27 = sadd.s32 1, %s1858_s27   ;;  %s1858_s27 = sphi %s1856_s27, %s1253_s27   ;;  %s1854_s30 = sphi %s1852_s30, %s1853_s30   ;;  %s1850_s15 = sphi %s1848_s15, %s1266_s15   ;;  %s1846_s24 = sphi %s1844_s24, %s1267_s24  }
 0x3ab   : >> { %1260 = vst [vmem:[%s1846_s24] sm:$0xff] %v1259_v23  ;;  %p1262_p0 = scmp.ge.s32.totalorder %s1261_s25, %s2394_s22  ;;  %p1252_p1 = scmp.ge.s32.totalorder %s1253_s27, %s2394_s22 }
 0x3ad   : >> { %s2463_s25 = smov (%p1262_p0, %s1261_s25), 0  ;;  %1255 = sbr.rel (!%p1252_p1) target bundleno = 938 (0x3aa), region = 187 }
 0x3ae   : >> { %s1444_s13 = sshll.u32 %s2463_s25, 3  ;;  %s1853_s30 = smov %s2463_s25  }
 0x3af   : >> { %s1266_s15 = scalar_lea.vmem %s1247_s26, %s1444_s13 [#allocation10]   ;;  %s1267_s24 = scalar_lea.vmem %s1249_s17, %s1444_s13  }
 0x3b2 PF: > { %s2451_s22 = sld [smem:[#allocation14_spill]]  ;;  %s2453_s19 = smov %s1818_s20 }
 0x3b3   : > { %s2452_s28 = sld [smem:[#allocation15_spill]]  ;;  %s2454_s20 = smov %s1822_s21 }
 0x3b8   : > { %p25_p3 = scmp.ge.s32.totalorder %s2451_s22, 5  }
 0x3b9   : > { %s2455_s21 = smov %s2452_s28 }
 0x3ba   :  { %27 = sbr.rel (!%p25_p3) target bundleno = 8 (0x8), region = 198 }
 0x3bf   :  { %1283 = vsyncpa [#allocation4], 1 }
 0x3c0   :  { %1285 = vsyncpa [#allocation4 + $0x1], 1 }
 0x3c1   :  { %1286 = vsyncpa [#allocation6], 1 }
 0x3c2   :  { %1287 = vsyncpa [#allocation9], 1 }

</bundles_post_ra>
